<compile_context>
chip_gen: v6e
topology: v6e:2x2x1
jax: 0.10.0
libtpu: 0.0.40
codegen_flags: <defaults>
</compile_context>

<pallas_src>
from functools import partial

import jax
import jax.numpy as jnp
import numpy as np
from jax import lax
from jax.experimental import pallas as pl
from jax.experimental.pallas import tpu as pltpu

RNN_HIDDEN = 32  # args.rnn_hidden_size


# --------------------------------------------------------------------------
# One-time parameter packing (hoisted out of the hot path)
# --------------------------------------------------------------------------
def prepare_params(params, weight_dtype=jnp.bfloat16):
    """Repack PyTorch-layout params into kernel-ready matrices (call once)."""
    w1 = np.asarray(params["w_conv1"], np.float32)   # (16, 27, 3, 3)
    b1 = np.asarray(params["b_conv1"], np.float32)
    w2 = np.asarray(params["w_conv2"], np.float32)   # (32, 16, 2, 2)
    b2 = np.asarray(params["b_conv2"], np.float32)

    # conv1 (27->16, k=3, s=2) as a dense linear map on the NHWC row-major
    # flatten of x: row index (h*8 + w)*27 + ci ; col index (oh*3 + ow)*16 + co.
    T1 = np.zeros((8 * 8 * 27, 3 * 3 * 16), np.float32)
    for oh in range(3):
        for ow in range(3):
            col0 = (oh * 3 + ow) * 16
            for kh in range(3):
                for kw in range(3):
                    row0 = ((2 * oh + kh) * 8 + (2 * ow + kw)) * 27
                    T1[row0:row0 + 27, col0:col0 + 16] = w1[:, :, kh, kw].T
    b1_flat = np.tile(b1, 9)                          # (144,)

    # conv2 (16->32, k=2, s=1).  Input layout is T1's output layout; output
    # layout is PyTorch's NCHW flatten order (co*4 + oh*2 + ow) so nn.Flatten +
    # Linear needs no runtime permute.
    T2 = np.zeros((3 * 3 * 16, 32 * 2 * 2), np.float32)
    for oh in range(2):
        for ow in range(2):
            for kh in range(2):
                for kw in range(2):
                    row0 = ((oh + kh) * 3 + (ow + kw)) * 16
                    cols = np.arange(32) * 4 + oh * 2 + ow
                    T2[row0:row0 + 16, cols] = w2[:, :, kh, kw].T
    b2_flat = np.repeat(b2, 4)                        # (128,)

    w_fc = np.asarray(params["w_fc"], np.float32).T            # (128, H)
    b_fc = np.asarray(params["b_fc"], np.float32)
    w_ih = np.asarray(params["w_ih"], np.float32).T.copy()     # (H, 4H)
    w_hh = np.asarray(params["w_hh"], np.float32).T.copy()     # (H, 4H)
    b_l = (np.asarray(params["b_ih"], np.float32)
           + np.asarray(params["b_hh"], np.float32)).copy()
    H = w_ih.shape[0]
    # tanh(z) = 2*sigmoid(2z) - 1: pre-scale the candidate ("g") gate columns
    # by 2 so the kernel needs only ONE full-width sigmoid per step (EUP).
    w_ih[:, 2 * H:3 * H] *= 2.0
    w_hh[:, 2 * H:3 * H] *= 2.0
    b_l[2 * H:3 * H] *= 2.0

    return {
        "t1": jnp.asarray(T1, weight_dtype),                   # (1728, 144)
        "b1": jnp.asarray(b1_flat, jnp.float32).reshape(1, -1),
        "t2": jnp.asarray(T2, weight_dtype),                   # (144, 128)
        "b2": jnp.asarray(b2_flat, jnp.float32).reshape(1, -1),
        "w_fc": jnp.asarray(w_fc, weight_dtype),               # (128, H)
        "b_fc": jnp.asarray(b_fc, jnp.float32).reshape(1, -1),
        "w_ih": jnp.asarray(w_ih, weight_dtype),               # (H, 4H)
        "w_hh": jnp.asarray(w_hh, weight_dtype),               # (H, 4H)
        "b_lstm": jnp.asarray(b_l, jnp.float32).reshape(1, -1),
    }


# --------------------------------------------------------------------------
# Fused Pallas kernel: conv1 + conv2 + fc + LSTM (per sequence tile)
# --------------------------------------------------------------------------
def _agent_fused_kernel(x_ref, t1_ref, b1_ref, t2_ref, b2_ref,
                        wfc_ref, bfc_ref, wih_ref, whh_ref, bl_ref,
                        h0_ref, c0_ref,
                        y_ref, st_ref,
                        xg_ref):
    tile_b, H = h0_ref.shape
    tile_rows = x_ref.shape[0]
    T = tile_rows // tile_b
    f32 = jnp.float32
    wdt = t1_ref.dtype

    # conv1 + conv2 + fc for every (sequence, time) row of the tile at once:
    # bf16 operands on the MXU, f32 accumulate, bias + ReLU in f32.
    h1 = jnp.maximum(
        jnp.dot(x_ref[...].astype(wdt), t1_ref[...],
                preferred_element_type=f32) + b1_ref[...], 0.0)       # (R, 144)
    h2 = jnp.maximum(
        jnp.dot(h1.astype(wdt), t2_ref[...],
                preferred_element_type=f32) + b2_ref[...], 0.0)       # (R, 128)
    h3 = jnp.maximum(
        jnp.dot(h2.astype(wdt), wfc_ref[...],
                preferred_element_type=f32) + bfc_ref[...], 0.0)      # (R, H)

    # Input-side LSTM gate pre-activations for all rows, parked in VMEM so the
    # time loop can pull "time t" rows with a strided slice (rows within the
    # tile are ordered s_local*T + t, i.e. sequence-major).
    xg_ref[...] = jnp.dot(h3.astype(wih_ref.dtype), wih_ref[...],
                          preferred_element_type=f32) + bl_ref[...]   # (R, 4H)

    w_hh = whh_ref[...]
    h = h0_ref[...].astype(f32)
    c = c0_ref[...].astype(f32)
    # T is tiny here (1-2): static unroll is fine.
    # TODO(synk): for long seq_length switch to lax.fori_loop with (h, c)
    # carries to bound vreg live ranges.
    for t in range(T):
        if T == 1:
            xg_t = xg_ref[...]
        else:
            xg_t = xg_ref[pl.ds(t, tile_b, stride=T), :]
        g = xg_t + jnp.dot(h.astype(w_hh.dtype), w_hh,
                           preferred_element_type=f32)                # (tile_b, 4H)
        sig = jax.nn.sigmoid(g)            # ONE full-width EUP pass per step
        i_g = sig[:, 0:H]
        f_g = sig[:, H:2 * H]
        cand = 2.0 * sig[:, 2 * H:3 * H] - 1.0   # == tanh(z); g-cols pre-scaled x2
        o_g = sig[:, 3 * H:4 * H]
        c = f_g * c + i_g * cand
        h = o_g * jnp.tanh(c)
        y_ref[:, t * H:(t + 1) * H] = h
    # Coalesced final-state writeback: [hT | cT] in one buffer.
    st_ref[:, 0:H] = h
    st_ref[:, H:2 * H] = c


# --------------------------------------------------------------------------
# Wrapper
# --------------------------------------------------------------------------
def _round_up(n, m):
    return (n + m - 1) // m * m


def _choose_tile_b(bseq, T, max_tile_rows):
    """Sequence-tile size: multiple of 16 sequences, ~max_tile_rows x-rows/tile."""
    max_tile_b = max(16, (max(1, max_tile_rows // T) // 16) * 16)
    n_tiles = -(-bseq // max_tile_b)
    tile_b = _round_up(-(-bseq // n_tiles), 16)
    return min(tile_b, max_tile_b)


@partial(jax.jit, static_argnames=("seq_length", "max_tile_rows"))
def agent_forward_pallas(x, rnn_state, packed, seq_length=1, max_tile_rows=512):
    """Agent.forward.  x: (B, 8, 8, 27) NHWC, rnn_state = (h0, c0), each
    (1, B//seq_length, H).  Rows of x are in the module's natural order
    (sequence-major: row = s*T + t); no wrapper transpose is materialized."""
    h0, c0 = rnn_state
    B = x.shape[0]
    T = seq_length
    if B % T:
        raise ValueError(f"batch {B} not divisible by seq_length {T}")
    Bseq = B // T
    H = packed["w_fc"].shape[1]

    tile_b = _choose_tile_b(Bseq, T, max_tile_rows)
    bseq_pad = _round_up(Bseq, tile_b)
    n_tiles = bseq_pad // tile_b
    tile_rows = tile_b * T

    x_flat = x.reshape(B, -1)                       # (B, 1728), rows (s, t) order
    h0p = h0[0].astype(jnp.float32)
    c0p = c0[0].astype(jnp.float32)
    if bseq_pad != Bseq:                            # pad to a whole number of tiles
        x_flat = jnp.pad(x_flat, ((0, (bseq_pad - Bseq) * T), (0, 0)))
        h0p = jnp.pad(h0p, ((0, bseq_pad - Bseq), (0, 0)))
        c0p = jnp.pad(c0p, ((0, bseq_pad - Bseq), (0, 0)))

    args = (x_flat,
            packed["t1"], packed["b1"], packed["t2"], packed["b2"],
            packed["w_fc"], packed["b_fc"],
            packed["w_ih"], packed["w_hh"], packed["b_lstm"],
            h0p, c0p)

    def w_spec(a):   # weights / biases: constant block index -> VMEM-resident
        return pl.BlockSpec(a.shape, lambda i: (0,) * a.ndim)

    in_specs = [pl.BlockSpec((tile_rows, x_flat.shape[1]), lambda i: (i, 0))]
    in_specs += [w_spec(a) for a in args[1:10]]
    in_specs += [pl.BlockSpec((tile_b, H), lambda i: (i, 0)),     # h0
                 pl.BlockSpec((tile_b, H), lambda i: (i, 0))]     # c0

    out_shape = (jax.ShapeDtypeStruct((bseq_pad, T * H), jnp.float32),   # y
                 jax.ShapeDtypeStruct((bseq_pad, 2 * H), jnp.float32))   # [hT|cT]
    out_specs = (pl.BlockSpec((tile_b, T * H), lambda i: (i, 0)),
                 pl.BlockSpec((tile_b, 2 * H), lambda i: (i, 0)))

    y_pad, st_pad = pl.pallas_call(
        _agent_fused_kernel,
        out_shape=out_shape,
        grid_spec=pltpu.PrefetchScalarGridSpec(
            num_scalar_prefetch=0,
            grid=(n_tiles,),
            in_specs=in_specs,
            out_specs=out_specs,
            scratch_shapes=[pltpu.VMEM((tile_rows, 4 * H), jnp.float32)]),
        compiler_params=pltpu.CompilerParams(
            dimension_semantics=("parallel",)),   # sequence tiles -> both TCs (v7x)
    )(*args)

    y = y_pad[:Bseq].reshape(B, H)     # (Bseq, T*H) -> (B, H): free (row = s*T+t)
    hT = st_pad[:Bseq, :H]
    cT = st_pad[:Bseq, H:]
    return y, (hT[None], cT[None])

# TODO(synk): get_action/get_value's CategoricalMasked sampling needs runtime
# env mask queries (vec_client.getUnitLocationMasks / getUnitActionMasks) and
# is not part of forward(); only forward() is implemented here.


# --------------------------------------------------------------------------
# Pure-JAX reference (correctness check)
# --------------------------------------------------------------------------
def agent_forward_ref(x, rnn_state, params, seq_length=1):
    h0, c0 = rnn_state
    B = x.shape[0]
    w1 = jnp.transpose(params["w_conv1"], (2, 3, 1, 0))
    y = lax.conv_general_dilated(x, w1, (2, 2), "VALID",
                                 dimension_numbers=("NHWC", "HWIO", "NHWC"))
    y = jnp.maximum(y + params["b_conv1"], 0.0)
    w2 = jnp.transpose(params["w_conv2"], (2, 3, 1, 0))
    y = lax.conv_general_dilated(y, w2, (1, 1), "VALID",
                                 dimension_numbers=("NHWC", "HWIO", "NHWC"))
    y = jnp.maximum(y + params["b_conv2"], 0.0)
    flat = jnp.transpose(y, (0, 3, 1, 2)).reshape(B, -1)
    h3 = jnp.maximum(flat @ jnp.transpose(params["w_fc"]) + params["b_fc"], 0.0)
    H = h3.shape[-1]
    xs = h3.reshape(B // seq_length, seq_length, H)
    h, c = h0[0], c0[0]
    ys = []
    for t in range(seq_length):
        g = (xs[:, t, :] @ jnp.transpose(params["w_ih"])
             + h @ jnp.transpose(params["w_hh"])
             + params["b_ih"] + params["b_hh"])
        i_g = jax.nn.sigmoid(g[:, :H])
        f_g = jax.nn.sigmoid(g[:, H:2 * H])
        g_g = jnp.tanh(g[:, 2 * H:3 * H])
        o_g = jax.nn.sigmoid(g[:, 3 * H:4 * H])
        c = f_g * c + i_g * g_g
        h = o_g * jnp.tanh(c)
        ys.append(h)
    y_out = jnp.stack(ys, axis=1).reshape(B, H)
    return y_out, (h[None], c[None])


# --------------------------------------------------------------------------
# Deterministic synthetic parameters (PyTorch layouts)
# --------------------------------------------------------------------------
def make_params(key, H):
    ks = jax.random.split(key, 10)

    def init(k, shape, fan_in):
        return (jax.random.normal(k, shape, jnp.float32) / np.sqrt(fan_in)).astype(jnp.float32)

    return {
        "w_conv1": init(ks[0], (16, 27, 3, 3), 27 * 9),   # Conv2d(27,16,3,s=2)
        "b_conv1": 0.1 * jax.random.normal(ks[5], (16,), jnp.float32),
        "w_conv2": init(ks[1], (32, 16, 2, 2), 16 * 4),   # Conv2d(16,32,2)
        "b_conv2": 0.1 * jax.random.normal(ks[6], (32,), jnp.float32),
        "w_fc":    init(ks[2], (H, 128), 128),            # Linear(128,H)
        "b_fc":    0.1 * jax.random.normal(ks[7], (H,), jnp.float32),
        "w_ih":    init(ks[3], (4 * H, H), H),            # LSTM weight_ih_l0
        "w_hh":    init(ks[4], (4 * H, H), H),            # LSTM weight_hh_l0
        "b_ih":    0.1 * jax.random.normal(ks[8], (4 * H,), jnp.float32),
        "b_hh":    0.1 * jax.random.normal(ks[9], (4 * H,), jnp.float32),
    }


if __name__ == "__main__":
    key = jax.random.PRNGKey(0)
    kp, kx, kh, kc = jax.random.split(key, 4)
    H = RNN_HIDDEN
    params = make_params(kp, H)
    packed = prepare_params(params)          # one-time weight repack (hoisted)

    TOL = dict(rtol=2e-2, atol=2e-2)         # bf16 weights, f32 accumulate

    # ----- seq_length = 1 (inference path) -----
    B = 8
    x = jax.random.uniform(kx, (B, 8, 8, 27), jnp.float32)   # NHWC obs
    h0 = jax.random.normal(kh, (1, B, H), jnp.float32) * 0.1
    c0 = jax.random.normal(kc, (1, B, H), jnp.float32) * 0.1
    out1, (hT1, cT1) = agent_forward_pallas(x, (h0, c0), packed, seq_length=1)
    out1 = jax.block_until_ready(out1)
    r1, (rh1, rc1) = agent_forward_ref(x, (h0, c0), params, seq_length=1)
    np.testing.assert_allclose(np.asarray(out1), np.asarray(r1), **TOL)
    np.testing.assert_allclose(np.asarray(hT1), np.asarray(rh1), **TOL)
    np.testing.assert_allclose(np.asarray(cT1), np.asarray(rc1), **TOL)

    # ----- seq_length = 2 (training path: B rows -> B//2 sequences of len 2) -----
    T2 = 2
    h0s = jax.random.normal(kh, (1, B // T2, H), jnp.float32) * 0.1
    c0s = jax.random.normal(kc, (1, B // T2, H), jnp.float32) * 0.1
    out2, (hT2, cT2) = agent_forward_pallas(x, (h0s, c0s), packed, seq_length=T2)
    out2 = jax.block_until_ready(out2)
    r2, (rh2, rc2) = agent_forward_ref(x, (h0s, c0s), params, seq_length=T2)
    np.testing.assert_allclose(np.asarray(out2), np.asarray(r2), **TOL)
    np.testing.assert_allclose(np.asarray(hT2), np.asarray(rh2), **TOL)
    np.testing.assert_allclose(np.asarray(cT2), np.asarray(rc2), **TOL)

    # ----- multi-tile grid (forces 2 sequence tiles; weights stay resident) -----
    B3, T3 = 64, 2
    x3 = jax.random.uniform(kx, (B3, 8, 8, 27), jnp.float32)
    h03 = jax.random.normal(kh, (1, B3 // T3, H), jnp.float32) * 0.1
    c03 = jax.random.normal(kc, (1, B3 // T3, H), jnp.float32) * 0.1
    out3, (hT3, cT3) = agent_forward_pallas(x3, (h03, c03), packed,
                                            seq_length=T3, max_tile_rows=32)
    out3 = jax.block_until_ready(out3)
    r3, (rh3, rc3) = agent_forward_ref(x3, (h03, c03), params, seq_length=T3)
    np.testing.assert_allclose(np.asarray(out3), np.asarray(r3), **TOL)
    np.testing.assert_allclose(np.asarray(hT3), np.asarray(rh3), **TOL)
    np.testing.assert_allclose(np.asarray(cT3), np.asarray(rc3), **TOL)

    print("KERNEL_OK")
</pallas_src>

<mosaic_0001>
module attributes {stable_mosaic.version = 11 : i64} {
  func.func @_agent_fused_kernel(%arg0: i32, %arg1: memref<16x1728xf32, #tpu.memory_space<vmem>>, %arg2: memref<1728x144xbf16, #tpu.memory_space<vmem>>, %arg3: memref<1x144xf32, #tpu.memory_space<vmem>>, %arg4: memref<144x128xbf16, #tpu.memory_space<vmem>>, %arg5: memref<1x128xf32, #tpu.memory_space<vmem>>, %arg6: memref<128x32xbf16, #tpu.memory_space<vmem>>, %arg7: memref<1x32xf32, #tpu.memory_space<vmem>>, %arg8: memref<32x128xbf16, #tpu.memory_space<vmem>>, %arg9: memref<32x128xbf16, #tpu.memory_space<vmem>>, %arg10: memref<1x128xf32, #tpu.memory_space<vmem>>, %arg11: memref<16x32xf32, #tpu.memory_space<vmem>>, %arg12: memref<16x32xf32, #tpu.memory_space<vmem>>, %arg13: memref<16x32xf32, #tpu.memory_space<vmem>>, %arg14: memref<16x64xf32, #tpu.memory_space<vmem>>, %arg15: memref<16x128xf32, #tpu.memory_space<vmem>>) attributes {dimension_semantics = [#tpu.dimension_semantics<parallel>], iteration_bounds = array<i64: 1>, scalar_prefetch = 0 : i64, scratch_operands = 1 : i64, tpu.core_type = #tpu.core_type<tc>, window_params = [{transform_indices = @transform_0, window_bounds = array<i64: 16, 1728>}, {pipeline_mode = #tpu.pipeline_mode<synchronous>, transform_indices = @transform_1, window_bounds = array<i64: 1728, 144>}, {pipeline_mode = #tpu.pipeline_mode<synchronous>, transform_indices = @transform_2, window_bounds = array<i64: 1, 144>}, {pipeline_mode = #tpu.pipeline_mode<synchronous>, transform_indices = @transform_3, window_bounds = array<i64: 144, 128>}, {pipeline_mode = #tpu.pipeline_mode<synchronous>, transform_indices = @transform_4, window_bounds = array<i64: 1, 128>}, {pipeline_mode = #tpu.pipeline_mode<synchronous>, transform_indices = @transform_5, window_bounds = array<i64: 128, 32>}, {pipeline_mode = #tpu.pipeline_mode<synchronous>, transform_indices = @transform_6, window_bounds = array<i64: 1, 32>}, {pipeline_mode = #tpu.pipeline_mode<synchronous>, transform_indices = @transform_7, window_bounds = array<i64: 32, 128>}, {pipeline_mode = #tpu.pipeline_mode<synchronous>, transform_indices = @transform_8, window_bounds = array<i64: 32, 128>}, {pipeline_mode = #tpu.pipeline_mode<synchronous>, transform_indices = @transform_9, window_bounds = array<i64: 1, 128>}, {transform_indices = @transform_10, window_bounds = array<i64: 16, 32>}, {transform_indices = @transform_11, window_bounds = array<i64: 16, 32>}, {transform_indices = @transform_12, window_bounds = array<i64: 16, 32>}, {transform_indices = @transform_13, window_bounds = array<i64: 16, 64>}]} {
    %c0 = arith.constant 0 : index
    %c0_0 = arith.constant 0 : index
    %0 = vector.load %arg1[%c0, %c0_0] : memref<16x1728xf32, #tpu.memory_space<vmem>>, vector<16x1728xf32>
    %1 = arith.truncf %0 : vector<16x1728xf32> to vector<16x1728xbf16>
    %c0_1 = arith.constant 0 : index
    %c0_2 = arith.constant 0 : index
    %2 = vector.load %arg2[%c0_1, %c0_2] : memref<1728x144xbf16, #tpu.memory_space<vmem>>, vector<1728x144xbf16>
    %cst = arith.constant dense<0.000000e+00> : vector<16x144xf32>
    %3 = tpu.matmul %1, %2, %cst {dimension_numbers = #tpu.dot_dimension_numbers<[1], [0], [0], [1], [0, 0, 1, 1], [], []>} : vector<16x1728xbf16>, vector<1728x144xbf16>, vector<16x144xf32> -> vector<16x144xf32>
    %c0_3 = arith.constant 0 : index
    %c0_4 = arith.constant 0 : index
    %4 = vector.load %arg3[%c0_3, %c0_4] : memref<1x144xf32, #tpu.memory_space<vmem>>, vector<1x144xf32>
    %5 = vector.broadcast %4 : vector<1x144xf32> to vector<16x144xf32>
    %6 = arith.addf %3, %5 : vector<16x144xf32>
    %cst_5 = arith.constant 0.000000e+00 : f32
    %7 = vector.broadcast %cst_5 : f32 to vector<16x144xf32>
    %8 = arith.maximumf %6, %7 : vector<16x144xf32>
    %9 = arith.truncf %8 : vector<16x144xf32> to vector<16x144xbf16>
    %c0_6 = arith.constant 0 : index
    %c0_7 = arith.constant 0 : index
    %10 = vector.load %arg4[%c0_6, %c0_7] : memref<144x128xbf16, #tpu.memory_space<vmem>>, vector<144x128xbf16>
    %cst_8 = arith.constant dense<0.000000e+00> : vector<16x128xf32>
    %11 = tpu.matmul %9, %10, %cst_8 {dimension_numbers = #tpu.dot_dimension_numbers<[1], [0], [0], [1], [0, 0, 1, 1], [], []>} : vector<16x144xbf16>, vector<144x128xbf16>, vector<16x128xf32> -> vector<16x128xf32>
    %c0_9 = arith.constant 0 : index
    %c0_10 = arith.constant 0 : index
    %12 = vector.load %arg5[%c0_9, %c0_10] : memref<1x128xf32, #tpu.memory_space<vmem>>, vector<1x128xf32>
    %13 = vector.broadcast %12 : vector<1x128xf32> to vector<16x128xf32>
    %14 = arith.addf %11, %13 : vector<16x128xf32>
    %cst_11 = arith.constant 0.000000e+00 : f32
    %15 = vector.broadcast %cst_11 : f32 to vector<16x128xf32>
    %16 = arith.maximumf %14, %15 : vector<16x128xf32>
    %17 = arith.truncf %16 : vector<16x128xf32> to vector<16x128xbf16>
    %c0_12 = arith.constant 0 : index
    %c0_13 = arith.constant 0 : index
    %18 = vector.load %arg6[%c0_12, %c0_13] : memref<128x32xbf16, #tpu.memory_space<vmem>>, vector<128x32xbf16>
    %cst_14 = arith.constant dense<0.000000e+00> : vector<16x32xf32>
    %19 = tpu.matmul %17, %18, %cst_14 {dimension_numbers = #tpu.dot_dimension_numbers<[1], [0], [0], [1], [0, 0, 1, 1], [], []>} : vector<16x128xbf16>, vector<128x32xbf16>, vector<16x32xf32> -> vector<16x32xf32>
    %c0_15 = arith.constant 0 : index
    %c0_16 = arith.constant 0 : index
    %20 = vector.load %arg7[%c0_15, %c0_16] : memref<1x32xf32, #tpu.memory_space<vmem>>, vector<1x32xf32>
    %21 = vector.broadcast %20 : vector<1x32xf32> to vector<16x32xf32>
    %22 = arith.addf %19, %21 : vector<16x32xf32>
    %cst_17 = arith.constant 0.000000e+00 : f32
    %23 = vector.broadcast %cst_17 : f32 to vector<16x32xf32>
    %24 = arith.maximumf %22, %23 : vector<16x32xf32>
    %25 = arith.truncf %24 : vector<16x32xf32> to vector<16x32xbf16>
    %c0_18 = arith.constant 0 : index
    %c0_19 = arith.constant 0 : index
    %26 = vector.load %arg8[%c0_18, %c0_19] : memref<32x128xbf16, #tpu.memory_space<vmem>>, vector<32x128xbf16>
    %cst_20 = arith.constant dense<0.000000e+00> : vector<16x128xf32>
    %27 = tpu.matmul %25, %26, %cst_20 {dimension_numbers = #tpu.dot_dimension_numbers<[1], [0], [0], [1], [0, 0, 1, 1], [], []>} : vector<16x32xbf16>, vector<32x128xbf16>, vector<16x128xf32> -> vector<16x128xf32>
    %c0_21 = arith.constant 0 : index
    %c0_22 = arith.constant 0 : index
    %28 = vector.load %arg10[%c0_21, %c0_22] : memref<1x128xf32, #tpu.memory_space<vmem>>, vector<1x128xf32>
    %29 = vector.broadcast %28 : vector<1x128xf32> to vector<16x128xf32>
    %30 = arith.addf %27, %29 : vector<16x128xf32>
    %c0_23 = arith.constant 0 : index
    %c0_24 = arith.constant 0 : index
    %31 = vector.load %arg15[%c0_23, %c0_24] : memref<16x128xf32, #tpu.memory_space<vmem>>, vector<16x128xf32>
    tpu.vector_store %arg15[%c0_23, %c0_24], %30 {strides = array<i32>} : memref<16x128xf32, #tpu.memory_space<vmem>>, vector<16x128xf32>,
    %c0_25 = arith.constant 0 : index
    %c0_26 = arith.constant 0 : index
    %32 = vector.load %arg9[%c0_25, %c0_26] : memref<32x128xbf16, #tpu.memory_space<vmem>>, vector<32x128xbf16>
    %c0_27 = arith.constant 0 : index
    %c0_28 = arith.constant 0 : index
    %33 = vector.load %arg11[%c0_27, %c0_28] : memref<16x32xf32, #tpu.memory_space<vmem>>, vector<16x32xf32>
    %c0_29 = arith.constant 0 : index
    %c0_30 = arith.constant 0 : index
    %34 = vector.load %arg12[%c0_29, %c0_30] : memref<16x32xf32, #tpu.memory_space<vmem>>, vector<16x32xf32>
    %c0_31 = arith.constant 0 : index
    %c0_32 = arith.constant 0 : index
    %35 = vector.load %arg15[%c0_31, %c0_32] : memref<16x128xf32, #tpu.memory_space<vmem>>, vector<16x128xf32>
    %36 = arith.truncf %33 : vector<16x32xf32> to vector<16x32xbf16>
    %cst_33 = arith.constant dense<0.000000e+00> : vector<16x128xf32>
    %37 = tpu.matmul %36, %32, %cst_33 {dimension_numbers = #tpu.dot_dimension_numbers<[1], [0], [0], [1], [0, 0, 1, 1], [], []>} : vector<16x32xbf16>, vector<32x128xbf16>, vector<16x128xf32> -> vector<16x128xf32>
    %38 = arith.addf %35, %37 : vector<16x128xf32>
    %39 = arith.negf %38 : vector<16x128xf32>
    %40 = math.exp %39 : vector<16x128xf32>
    %cst_34 = arith.constant 1.000000e+00 : f32
    %41 = vector.broadcast %cst_34 : f32 to vector<16x128xf32>
    %42 = arith.addf %41, %40 : vector<16x128xf32>
    %43 = arith.divf %41, %42 : vector<16x128xf32>
    %44 = vector.extract_strided_slice %43 {offsets = [0, 0], sizes = [16, 32], strides = [1, 1]} : vector<16x128xf32> to vector<16x32xf32>
    %45 = vector.extract_strided_slice %43 {offsets = [0, 32], sizes = [16, 32], strides = [1, 1]} : vector<16x128xf32> to vector<16x32xf32>
    %46 = vector.extract_strided_slice %43 {offsets = [0, 64], sizes = [16, 32], strides = [1, 1]} : vector<16x128xf32> to vector<16x32xf32>
    %cst_35 = arith.constant 2.000000e+00 : f32
    %47 = vector.broadcast %cst_35 : f32 to vector<16x32xf32>
    %48 = arith.mulf %47, %46 : vector<16x32xf32>
    %cst_36 = arith.constant 1.000000e+00 : f32
    %49 = vector.broadcast %cst_36 : f32 to vector<16x32xf32>
    %50 = arith.subf %48, %49 : vector<16x32xf32>
    %51 = vector.extract_strided_slice %43 {offsets = [0, 96], sizes = [16, 32], strides = [1, 1]} : vector<16x128xf32> to vector<16x32xf32>
    %52 = arith.mulf %45, %34 : vector<16x32xf32>
    %53 = arith.mulf %44, %50 : vector<16x32xf32>
    %54 = arith.addf %52, %53 : vector<16x32xf32>
    %55 = math.tanh %54 : vector<16x32xf32>
    %56 = arith.mulf %51, %55 : vector<16x32xf32>
    %c0_37 = arith.constant 0 : index
    %c0_38 = arith.constant 0 : index
    %57 = vector.load %arg13[%c0_37, %c0_38] : memref<16x32xf32, #tpu.memory_space<vmem>>, vector<16x32xf32>
    tpu.vector_store %arg13[%c0_37, %c0_38], %56 {strides = array<i32>} : memref<16x32xf32, #tpu.memory_space<vmem>>, vector<16x32xf32>,
    %c0_39 = arith.constant 0 : index
    %c0_40 = arith.constant 0 : index
    %58 = vector.load %arg14[%c0_39, %c0_40] : memref<16x64xf32, #tpu.memory_space<vmem>>, vector<16x32xf32>
    tpu.vector_store %arg14[%c0_39, %c0_40], %56 {strides = array<i32>} : memref<16x64xf32, #tpu.memory_space<vmem>>, vector<16x32xf32>,
    %c0_41 = arith.constant 0 : index
    %c32 = arith.constant 32 : index
    %59 = vector.load %arg14[%c0_41, %c32] : memref<16x64xf32, #tpu.memory_space<vmem>>, vector<16x32xf32>
    tpu.vector_store %arg14[%c0_41, %c32], %54 {strides = array<i32>} : memref<16x64xf32, #tpu.memory_space<vmem>>, vector<16x32xf32>,
    return
  }
  func.func @transform_0(%arg0: i32) -> (i32, i32) {
    %c0_i32 = arith.constant 0 : i32
    %c0_i32_0 = arith.constant 0 : i32
    return %arg0, %c0_i32 : i32, i32
  }
  func.func @transform_1(%arg0: i32) -> (i32, i32) {
    %c0_i32 = arith.constant 0 : i32
    %c0_i32_0 = arith.constant 0 : i32
    %c0_i32_1 = arith.constant 0 : i32
    return %c0_i32, %c0_i32_0 : i32, i32
  }
  func.func @transform_2(%arg0: i32) -> (i32, i32) {
    %c0_i32 = arith.constant 0 : i32
    %c0_i32_0 = arith.constant 0 : i32
    %c0_i32_1 = arith.constant 0 : i32
    return %c0_i32, %c0_i32_0 : i32, i32
  }
  func.func @transform_3(%arg0: i32) -> (i32, i32) {
    %c0_i32 = arith.constant 0 : i32
    %c0_i32_0 = arith.constant 0 : i32
    %c0_i32_1 = arith.constant 0 : i32
    return %c0_i32, %c0_i32_0 : i32, i32
  }
  func.func @transform_4(%arg0: i32) -> (i32, i32) {
    %c0_i32 = arith.constant 0 : i32
    %c0_i32_0 = arith.constant 0 : i32
    %c0_i32_1 = arith.constant 0 : i32
    return %c0_i32, %c0_i32_0 : i32, i32
  }
  func.func @transform_5(%arg0: i32) -> (i32, i32) {
    %c0_i32 = arith.constant 0 : i32
    %c0_i32_0 = arith.constant 0 : i32
    %c0_i32_1 = arith.constant 0 : i32
    return %c0_i32, %c0_i32_0 : i32, i32
  }
  func.func @transform_6(%arg0: i32) -> (i32, i32) {
    %c0_i32 = arith.constant 0 : i32
    %c0_i32_0 = arith.constant 0 : i32
    %c0_i32_1 = arith.constant 0 : i32
    return %c0_i32, %c0_i32_0 : i32, i32
  }
  func.func @transform_7(%arg0: i32) -> (i32, i32) {
    %c0_i32 = arith.constant 0 : i32
    %c0_i32_0 = arith.constant 0 : i32
    %c0_i32_1 = arith.constant 0 : i32
    return %c0_i32, %c0_i32_0 : i32, i32
  }
  func.func @transform_8(%arg0: i32) -> (i32, i32) {
    %c0_i32 = arith.constant 0 : i32
    %c0_i32_0 = arith.constant 0 : i32
    %c0_i32_1 = arith.constant 0 : i32
    return %c0_i32, %c0_i32_0 : i32, i32
  }
  func.func @transform_9(%arg0: i32) -> (i32, i32) {
    %c0_i32 = arith.constant 0 : i32
    %c0_i32_0 = arith.constant 0 : i32
    %c0_i32_1 = arith.constant 0 : i32
    return %c0_i32, %c0_i32_0 : i32, i32
  }
  func.func @transform_10(%arg0: i32) -> (i32, i32) {
    %c0_i32 = arith.constant 0 : i32
    %c0_i32_0 = arith.constant 0 : i32
    return %arg0, %c0_i32 : i32, i32
  }
  func.func @transform_11(%arg0: i32) -> (i32, i32) {
    %c0_i32 = arith.constant 0 : i32
    %c0_i32_0 = arith.constant 0 : i32
    return %arg0, %c0_i32 : i32, i32
  }
  func.func @transform_12(%arg0: i32) -> (i32, i32) {
    %c0_i32 = arith.constant 0 : i32
    %c0_i32_0 = arith.constant 0 : i32
    return %arg0, %c0_i32 : i32, i32
  }
  func.func @transform_13(%arg0: i32) -> (i32, i32) {
    %c0_i32 = arith.constant 0 : i32
    %c0_i32_0 = arith.constant 0 : i32
    return %arg0, %c0_i32 : i32, i32
  }
}

</mosaic_0001>

<bundles_post_ra>
// kernel: agent_forward_pallas.1
= control target key start
LH: loop header
LB: loop body
LE: loop exit
PB: predicated region body
PF: predicated region fallthrough
CT: control target
= control target key end

     0   :  { %vm1394_vm0 = vcmask 523264   ;;  %vm1784_vm1 = vcmask 130048   ;;  %vm2830_vm2 = vmmov 0   ;;  %s2831_s20 = smov 32   ;;  %vm1970_vm3 = vcmask 261120   ;;  %s3770_s1 = inlined_call_operand.vmem [shape: bf16[1728,144], index: 1, kind: input, shape index: {}]   ;;  %s3771_s0 = inlined_call_operand.vmem [shape: f32[16,1728], index: 0, kind: input, shape index: {}]   ;;  %s3772_s3 = inlined_call_operand.vmem [shape: bf16[144,128], index: 3, kind: input, shape index: {}]   ;;  %s3773_s5 = inlined_call_operand.vmem [shape: bf16[128,32], index: 5, kind: input, shape index: {}]   ;;  %s3774_s2 = inlined_call_operand.vmem [shape: f32[1,144], index: 2, kind: input, shape index: {}]   ;;  %s3775_s4 = inlined_call_operand.vmem [shape: f32[1,128], index: 4, kind: input, shape index: {}]   ;;  %s3776_s7 = inlined_call_operand.vmem [shape: bf16[32,128], index: 7, kind: input, shape index: {}]   ;;  %s3777_s8 = inlined_call_operand.vmem [shape: bf16[32,128], index: 8, kind: input, shape index: {}]   ;;  %s3778_s11 = inlined_call_operand.vmem [shape: f32[16,32], index: 11, kind: input, shape index: {}]   ;;  %s3779_s6 = inlined_call_operand.vmem [shape: f32[1,32], index: 6, kind: input, shape index: {}]   ;;  %s3780_s10 = inlined_call_operand.vmem [shape: f32[16,32], index: 10, kind: input, shape index: {}]   ;;  %s3781_s9 = inlined_call_operand.vmem [shape: f32[1,128], index: 9, kind: input, shape index: {}]   ;;  %s3782_s12 = inlined_call_operand.vmem [shape: f32[16,32], index: 12, kind: output, shape index: {0}]   ;;  %s3783_s13 = inlined_call_operand.vmem [shape: f32[16,64], index: 13, kind: output, shape index: {1}]  }
   0x1   :  { %v2471_v0 = vld [vmem:[%s3770_s1 + $0x74] ss:$8 sps:$4 sm:$0xff]   ;;  %v2473_v1 = vld [vmem:[%s3770_s1 + $0x70] ss:$8 sps:$4 sm:$0xff]   ;;  %v2477_v4 = vld [vmem:[%s3770_s1 + $0x64] ss:$8 sps:$4 sm:$0xff]  }
   0x2   :  { %1398 = vmatprep.subr.bf16.mxu0 %v2471_v0  ;;  %v2474_v2 = vld [vmem:[%s3770_s1 + $0x174] ss:$8 sps:$4 sm:$0xff]   ;;  %v2476_v3 = vld [vmem:[%s3770_s1 + $0x170] ss:$8 sps:$4 sm:$0xff]   ;;  %v2479_v5 = vld [vmem:[%s3770_s1 + $0x60] ss:$8 sps:$4 sm:$0xff]  }
   0x3   :  { %1399 = vmatpush1.bf16.msra.mxu0 %v2473_v1  ;;  %1441 = vmatprep.subr.bf16.mxu1 %v2474_v2  ;;  %v2480_v6 = vld [vmem:[%s3770_s1 + $0x164] ss:$8 sps:$4 sm:$0xff]   ;;  %v2482_v7 = vld [vmem:[%s3770_s1 + $0x160] ss:$8 sps:$4 sm:$0xff]   ;;  %v2483_v8 = vld [vmem:[%s3770_s1 + $0x54] ss:$8 sps:$4 sm:$0xff]  }
   0x4   :  { %1442 = vmatpush1.bf16.msra.mxu1 %v2476_v3  ;;  %1400 = vmatprep.subr.bf16.mxu0 %v2477_v4  ;;  %v2485_v9 = vld [vmem:[%s3770_s1 + $0x50] ss:$8 sps:$4 sm:$0xff]   ;;  %v2486_v10 = vld [vmem:[%s3770_s1 + $0x154] ss:$8 sps:$4 sm:$0xff]   ;;  %v2489_v11 = vld [vmem:[%s3770_s1 + $0x44] ss:$8 sps:$4 sm:$0xff]  }
   0x5   :  { %1443 = vmatprep.subr.bf16.mxu1 %v2480_v6  ;;  %v2488_v12 = vld [vmem:[%s3770_s1 + $0x150] ss:$8 sps:$4 sm:$0xff]   ;;  %v2492_v13 = vld [vmem:[%s3770_s1 + $0x144] ss:$8 sps:$4 sm:$0xff]   ;;  %v2491_v14 = vld [vmem:[%s3770_s1 + $0x40] ss:$8 sps:$4 sm:$0xff]  }
   0x6   :  { %v2495_v15 = vld [vmem:[%s3770_s1 + $0x34] ss:$8 sps:$4 sm:$0xff]   ;;  %v2494_v16 = vld [vmem:[%s3770_s1 + $0x140] ss:$8 sps:$4 sm:$0xff]   ;;  %v2497_v18 = vld [vmem:[%s3770_s1 + $0x30] ss:$8 sps:$4 sm:$0xff]  }
   0x7   :  { %1401 = vmatpush1.bf16.msra.mxu0 %v2479_v5  ;;  %v2498_v17 = vld [vmem:[%s3770_s1 + $0x134] ss:$8 sps:$4 sm:$0xff]   ;;  %v2501_v19 = vld [vmem:[%s3770_s1 + $0x24] ss:$8 sps:$4 sm:$0xff]   ;;  %v2500_v20 = vld [vmem:[%s3770_s1 + $0x130] ss:$8 sps:$4 sm:$0xff]  }
   0x8   :  { %1402 = vmatprep.subr.bf16.mxu0 %v2483_v8  ;;  %1444 = vmatpush1.bf16.msra.mxu1 %v2482_v7  ;;  %v2504_v21 = vld [vmem:[%s3770_s1 + $0x124] ss:$8 sps:$4 sm:$0xff]   ;;  %v2503_v22 = vld [vmem:[%s3770_s1 + $0x20] ss:$8 sps:$4 sm:$0xff]   ;;  %v2507_v23 = vld [vmem:[%s3770_s1 + $0x14] ss:$8 sps:$4 sm:$0xff]  }
   0x9   :  { %1445 = vmatprep.subr.bf16.mxu1 %v2486_v10  ;;  %v2506_v24 = vld [vmem:[%s3770_s1 + $0x120] ss:$8 sps:$4 sm:$0xff]   ;;  %v2510_v25 = vld [vmem:[%s3770_s1 + $0x114] ss:$8 sps:$4 sm:$0xff]   ;;  %v2509_v26 = vld [vmem:[%s3770_s1 + $0x10] ss:$8 sps:$4 sm:$0xff]  }
   0xa   :  { %v2513_v27 = vld [vmem:[%s3770_s1 + $0x4] ss:$8 sps:$4 sm:$0xff]   ;;  %v2512_v28 = vld [vmem:[%s3770_s1 + $0x110] ss:$8 sps:$4 sm:$0xff]   ;;  %v2515_v30 = vld [vmem:[%s3770_s1] ss:$8 sps:$4 sm:$0xff]  }
   0xb   :  { %1403 = vmatpush1.bf16.msra.mxu0 %v2485_v9  ;;  %v2516_v29 = vld [vmem:[%s3770_s1 + $0x104] ss:$8 sps:$4 sm:$0xff]   ;;  %v2519_v31 = vld [vmem:[%s3770_s1 + $0xf4] ss:$8 sps:$4 sm:$0xff]   ;;  %v2518_v32 = vld [vmem:[%s3770_s1 + $0x100] ss:$8 sps:$4 sm:$0xff]  }
   0xc   :  { %1404 = vmatprep.subr.bf16.mxu0 %v2489_v11  ;;  %1446 = vmatpush1.bf16.msra.mxu1 %v2488_v12  ;;  %v2522_v33 = vld [vmem:[%s3770_s1 + $0x1f4] ss:$8 sps:$4 sm:$0xff]   ;;  %v2521_v34 = vld [vmem:[%s3770_s1 + $0xf0] ss:$8 sps:$4 sm:$0xff]   ;;  %v2525_v35 = vld [vmem:[%s3770_s1 + $0xe4] ss:$8 sps:$4 sm:$0xff]  }
   0xd   :  { %1447 = vmatprep.subr.bf16.mxu1 %v2492_v13  ;;  %v2524_v36 = vld [vmem:[%s3770_s1 + $0x1f0] ss:$8 sps:$4 sm:$0xff]   ;;  %v2528_v37 = vld [vmem:[%s3770_s1 + $0x1e4] ss:$8 sps:$4 sm:$0xff]   ;;  %v2527_v38 = vld [vmem:[%s3770_s1 + $0xe0] ss:$8 sps:$4 sm:$0xff]  }
   0xe   :  { %v2531_v39 = vld [vmem:[%s3770_s1 + $0xd4] ss:$8 sps:$4 sm:$0xff]   ;;  %v2530_v40 = vld [vmem:[%s3770_s1 + $0x1e0] ss:$8 sps:$4 sm:$0xff]   ;;  %v2533_v42 = vld [vmem:[%s3770_s1 + $0xd0] ss:$8 sps:$4 sm:$0xff]  }
   0xf   :  { %1405 = vmatpush1.bf16.msra.mxu0 %v2491_v14  ;;  %v2534_v41 = vld [vmem:[%s3770_s1 + $0x1d4] ss:$8 sps:$4 sm:$0xff]   ;;  %v2537_v43 = vld [vmem:[%s3770_s1 + $0xc4] ss:$8 sps:$4 sm:$0xff]   ;;  %v2536_v44 = vld [vmem:[%s3770_s1 + $0x1d0] ss:$8 sps:$4 sm:$0xff]  }
  0x10   :  { %1406 = vmatprep.subr.bf16.mxu0 %v2495_v15  ;;  %1448 = vmatpush1.bf16.msra.mxu1 %v2494_v16  ;;  %v2540_v45 = vld [vmem:[%s3770_s1 + $0x1c4] ss:$8 sps:$4 sm:$0xff]   ;;  %v59_v47 = vld [vmem:[%s3771_s0 + $0x78] sm:$0xff]  ;;  %v2539_v48 = vld [vmem:[%s3770_s1 + $0xc0] ss:$8 sps:$4 sm:$0xff]   ;;  %vm2156_vm4 = vcmask 523520  }
  0x11   :  { %1449 = vmatprep.subr.bf16.mxu1 %v2498_v17  ;;  %v45_v46 = vld [vmem:[%s3771_s0 + $0x8] sm:$0xff]  ;;  %v2543_v50 = vld [vmem:[%s3770_s1 + $0xb4] ss:$8 sps:$4 sm:$0xff]   ;;  %v2545_v56 = vld [vmem:[%s3770_s1 + $0xb0] ss:$8 sps:$4 sm:$0xff]  }
  0x12   :  { %v73_v49 = vpack.c.bf16 %v59_v47, %v45_v46  ;;  %v2542_v51 = vld [vmem:[%s3770_s1 + $0x1c0] ss:$8 sps:$4 sm:$0xff]   ;;  %v47_v52 = vld [vmem:[%s3771_s0 + $0x18] sm:$0xff]  ;;  %v2549_v57 = vld [vmem:[%s3770_s1 + $0xa4] ss:$8 sps:$4 sm:$0xff]  }
  0x13   :  { %1407 = vmatpush1.bf16.msra.mxu0 %v2497_v18  ;;  %v61_v53 = vld [vmem:[%s3771_s0 + $0x88] sm:$0xff]  ;;  %v2546_v54 = vld [vmem:[%s3770_s1 + $0x1b4] ss:$8 sps:$4 sm:$0xff]   ;;  %v2548_v58 = vld [vmem:[%s3770_s1 + $0x1b0] ss:$8 sps:$4 sm:$0xff]  }
  0x14   :  { %1408 = vmatprep.subr.bf16.mxu0 %v2501_v19  ;;  %1450 = vmatpush1.bf16.msra.mxu1 %v2500_v20  ;;  %v75_v55 = vpack.c.bf16 %v61_v53, %v47_v52  ;;  %v2552_v59 = vld [vmem:[%s3770_s1 + $0x1a4] ss:$8 sps:$4 sm:$0xff]   ;;  %v2551_v60 = vld [vmem:[%s3770_s1 + $0xa0] ss:$8 sps:$4 sm:$0xff]   ;;  %v2555_v61 = vld [vmem:[%s3770_s1 + $0x94] ss:$8 sps:$4 sm:$0xff]  }
  0x15   :  { %1451 = vmatprep.subr.bf16.mxu1 %v2504_v21  ;;  %1430 = vmatprep.mubr.bf16.mxu0 %v73_v49  ;;  %v2554_v62 = vld [vmem:[%s3770_s1 + $0x1a0] ss:$8 sps:$4 sm:$0xff]   ;;  %v2558_v63 = vld [vmem:[%s3770_s1 + $0x194] ss:$8 sps:$4 sm:$0xff]   ;;  %v2557_v0 = vld [vmem:[%s3770_s1 + $0x90] ss:$8 sps:$4 sm:$0xff]  }
  0x16   :  { %1473 = vmatprep.mubr.bf16.mxu1 %v75_v55  ;;  %v2560_v1 = vld [vmem:[%s3770_s1 + $0x190] ss:$8 sps:$4 sm:$0xff]   ;;  %v2561_v2 = vld [vmem:[%s3770_s1 + $0x84] ss:$8 sps:$4 sm:$0xff]   ;;  %v2563_v3 = vld [vmem:[%s3770_s1 + $0x80] ss:$8 sps:$4 sm:$0xff]  }
  0x17   :  { %1409 = vmatpush1.bf16.msra.mxu0 %v2503_v22  ;;  %v2564_v4 = vld [vmem:[%s3770_s1 + $0x184] ss:$8 sps:$4 sm:$0xff]   ;;  %v2566_v6 = vld [vmem:[%s3770_s1 + $0x180] ss:$8 sps:$4 sm:$0xff]   ;;  %v58_v7 = vld [vmem:[%s3771_s0 + $0x70] sm:$0xff] }
  0x18   :  { %1410 = vmatprep.subr.bf16.mxu0 %v2507_v23  ;;  %1452 = vmatpush1.bf16.msra.mxu1 %v2506_v24  ;;  %v44_v5 = vld [vmem:[%s3771_s0] sm:$0xff]  ;;  %v2569_v8 = vld [vmem:[%s3770_s1 + $0x274] ss:$8 sps:$4 sm:$0xff]   ;;  %v2567_v13 = vld [vmem:[%s3770_s1 + $0x270] ss:$8 sps:$4 sm:$0xff]  }
  0x19   :  { %1453 = vmatprep.subr.bf16.mxu1 %v2510_v25  ;;  %v46_v9 = vld [vmem:[%s3771_s0 + $0x10] sm:$0xff]  ;;  %v60_v10 = vld [vmem:[%s3771_s0 + $0x80] sm:$0xff]  ;;  %v72_v11 = vpack.c.bf16 %v58_v7, %v44_v5  ;;  %v65_v47 = vld [vmem:[%s3771_s0 + $0xa8] sm:$0xff] }
  0x1a   :  { %v2572_v12 = vld [vmem:[%s3770_s1 + $0x374] ss:$8 sps:$4 sm:$0xff]   ;;  %v74_v14 = vpack.c.bf16 %v60_v10, %v46_v9  ;;  %v2575_v15 = vld [vmem:[%s3770_s1 + $0x264] ss:$8 sps:$4 sm:$0xff]   ;;  %v2570_v16 = vld [vmem:[%s3770_s1 + $0x370] ss:$8 sps:$4 sm:$0xff]  }
  0x1b   :  { %1411 = vmatpush1.bf16.msra.mxu0 %v2509_v26  ;;  %v2578_v17 = vld [vmem:[%s3770_s1 + $0x364] ss:$8 sps:$4 sm:$0xff]   ;;  %v2573_v18 = vld [vmem:[%s3770_s1 + $0x260] ss:$8 sps:$4 sm:$0xff]   ;;  %v2581_v19 = vld [vmem:[%s3770_s1 + $0x254] ss:$8 sps:$4 sm:$0xff]  }
  0x1c   :  { %1412 = vmatprep.subr.bf16.mxu0 %v2513_v27  ;;  %1454 = vmatpush1.bf16.msra.mxu1 %v2512_v28  ;;  %v2576_v20 = vld [vmem:[%s3770_s1 + $0x360] ss:$8 sps:$4 sm:$0xff]   ;;  %v2584_v21 = vld [vmem:[%s3770_s1 + $0x354] ss:$8 sps:$4 sm:$0xff]   ;;  %v2579_v22 = vld [vmem:[%s3770_s1 + $0x250] ss:$8 sps:$4 sm:$0xff]  }
  0x1d   :  { %1455 = vmatprep.subr.bf16.mxu1 %v2516_v29  ;;  %v2587_v23 = vld [vmem:[%s3770_s1 + $0x244] ss:$8 sps:$4 sm:$0xff]   ;;  %v2582_v24 = vld [vmem:[%s3770_s1 + $0x350] ss:$8 sps:$4 sm:$0xff]   ;;  %v2585_v26 = vld [vmem:[%s3770_s1 + $0x240] ss:$8 sps:$4 sm:$0xff]  }
  0x1e   :  { %v2590_v25 = vld [vmem:[%s3770_s1 + $0x344] ss:$8 sps:$4 sm:$0xff]   ;;  %v2593_v27 = vld [vmem:[%s3770_s1 + $0x234] ss:$8 sps:$4 sm:$0xff]   ;;  %v2588_v28 = vld [vmem:[%s3770_s1 + $0x340] ss:$8 sps:$4 sm:$0xff]  }
  0x1f   :  { %1413 = vmatpush1.bf16.msra.mxu0 %v2515_v30  ;;  %v2596_v29 = vld [vmem:[%s3770_s1 + $0x334] ss:$8 sps:$4 sm:$0xff]   ;;  %v2591_v30 = vld [vmem:[%s3770_s1 + $0x230] ss:$8 sps:$4 sm:$0xff]   ;;  %v2609_v46 = vld [vmem:[%s3770_s1 + $0x200] ss:$8 sps:$4 sm:$0xff]  }
  0x20   :  { %1414 = vmatprep.subr.bf16.mxu0 %v2519_v31  ;;  %1456 = vmatpush1.bf16.msra.mxu1 %v2518_v32  ;;  %v2599_v31 = vld [vmem:[%s3770_s1 + $0x224] ss:$8 sps:$4 sm:$0xff]   ;;  %v2594_v32 = vld [vmem:[%s3770_s1 + $0x330] ss:$8 sps:$4 sm:$0xff]   ;;  %v2653_v9 = vld [vmem:[%s3770_s1 + $0x294] ss:$8 sps:$4 sm:$0xff]  }
  0x21   :  { %1457 = vmatprep.subr.bf16.mxu1 %v2522_v33  ;;  %v2602_v33 = vld [vmem:[%s3770_s1 + $0x324] ss:$8 sps:$4 sm:$0xff]   ;;  %v2615_v52 = vld [vmem:[%s3770_s1 + $0x2f0] ss:$8 sps:$4 sm:$0xff]   ;;  %v2648_v10 = vld [vmem:[%s3770_s1 + $0x3a0] ss:$8 sps:$4 sm:$0xff]  }
  0x22   :  { %v2623_v53 = vld [vmem:[%s3770_s1 + $0x2e4] ss:$8 sps:$4 sm:$0xff]  }
  0x23   :  { %1415 = vmatpush2.bf16.msra.mxu0 %v2521_v34  ;;  %v2597_v34 = vld [vmem:[%s3770_s1 + $0x220] ss:$8 sps:$4 sm:$0xff]   ;;  %v2626_v55 = vld [vmem:[%s3770_s1 + $0x3e4] ss:$8 sps:$4 sm:$0xff]  }
  0x24   :  { %1416 = vmatprep.subr.bf16.mxu0 %v2525_v35  ;;  %1458 = vmatpush2.bf16.msra.mxu1 %v2524_v36  ;;  %v2605_v35 = vld [vmem:[%s3770_s1 + $0x214] ss:$8 sps:$4 sm:$0xff]   ;;  %v2600_v36 = vld [vmem:[%s3770_s1 + $0x320] ss:$8 sps:$4 sm:$0xff]   ;;  %v2647_v5 = vld [vmem:[%s3770_s1 + $0x2a4] ss:$8 sps:$4 sm:$0xff]  }
  0x25   :  { %1459 = vmatprep.subr.bf16.mxu1 %v2528_v37  ;;  %v2608_v37 = vld [vmem:[%s3770_s1 + $0x314] ss:$8 sps:$4 sm:$0xff]   ;;  %v2650_v7 = vld [vmem:[%s3770_s1 + $0x3a4] ss:$8 sps:$4 sm:$0xff]  }
  0x27   :  { %1417 = vmatpush2.bf16.msra.mxu0 %v2527_v38  ;;  %v2603_v38 = vld [vmem:[%s3770_s1 + $0x210] ss:$8 sps:$4 sm:$0xff]  }
  0x28   :  { %1418 = vmatprep.subr.bf16.mxu0 %v2531_v39  ;;  %1460 = vmatpush2.bf16.msra.mxu1 %v2530_v40  ;;  %v2611_v39 = vld [vmem:[%s3770_s1 + $0x204] ss:$8 sps:$4 sm:$0xff]  }
  0x29   :  { %1461 = vmatprep.subr.bf16.mxu1 %v2534_v41  ;;  %v49_v40 = vld [vmem:[%s3771_s0 + $0x28] sm:$0xff]  ;;  %v63_v41 = vld [vmem:[%s3771_s0 + $0x98] sm:$0xff] }
  0x2b   :  { %1419 = vmatpush2.bf16.msra.mxu0 %v2533_v42  ;;  %v2606_v42 = vld [vmem:[%s3770_s1 + $0x310] ss:$8 sps:$4 sm:$0xff]  }
  0x2c   :  { %1420 = vmatprep.subr.bf16.mxu0 %v2537_v43  ;;  %1462 = vmatpush2.bf16.msra.mxu1 %v2536_v44  ;;  %v77_v43 = vpack.c.bf16 %v63_v41, %v49_v40  ;;  %v2614_v44 = vld [vmem:[%s3770_s1 + $0x304] ss:$8 sps:$4 sm:$0xff]   ;;  %v2678_v41 = vld [vmem:[%s3770_s1 + $0x550] ss:$8 sps:$4 sm:$0xff]  }
  0x2d   :  { %1463 = vmatprep.subr.bf16.mxu1 %v2540_v45  ;;  %v51_v45 = vld [vmem:[%s3771_s0 + $0x38] sm:$0xff]  ;;  %v69_v40 = vld [vmem:[%s3771_s0 + $0xc8] sm:$0xff] }
  0x2e   :  { %v79_v49 = vpack.c.bf16 %v65_v47, %v51_v45  ;;  %v2689_v45 = vld [vmem:[%s3770_s1 + $0x434] ss:$8 sps:$4 sm:$0xff]  }
  0x2f   :  { %1421 = vmatpush2.bf16.msra.mxu0 %v2539_v48  ;;  %v2617_v48 = vld [vmem:[%s3770_s1 + $0x2f4] ss:$8 sps:$4 sm:$0xff]  }
  0x30   :  { %1422 = vmatprep.subr.bf16.mxu0 %v2543_v50  ;;  %1464 = vmatpush2.bf16.msra.mxu1 %v2542_v51  ;;  %v2612_v50 = vld [vmem:[%s3770_s1 + $0x300] ss:$8 sps:$4 sm:$0xff]   ;;  %v2620_v51 = vld [vmem:[%s3770_s1 + $0x3f4] ss:$8 sps:$4 sm:$0xff]  }
  0x31   :  { %1465 = vmatprep.subr.bf16.mxu1 %v2546_v54  ;;  %v2618_v54 = vld [vmem:[%s3770_s1 + $0x3f0] ss:$8 sps:$4 sm:$0xff]   ;;  %v2692_v47 = vld [vmem:[%s3770_s1 + $0x534] ss:$8 sps:$4 sm:$0xff]  }
  0x33   :  { %1423 = vmatpush2.bf16.msra.mxu0 %v2545_v56  ;;  %v2621_v56 = vld [vmem:[%s3770_s1 + $0x2e0] ss:$8 sps:$4 sm:$0xff]  }
  0x34   :  { %1424 = vmatprep.subr.bf16.mxu0 %v2549_v57  ;;  %1466 = vmatpush2.bf16.msra.mxu1 %v2548_v58  ;;  %v2629_v57 = vld [vmem:[%s3770_s1 + $0x2d4] ss:$8 sps:$4 sm:$0xff]   ;;  %v2624_v58 = vld [vmem:[%s3770_s1 + $0x3e0] ss:$8 sps:$4 sm:$0xff]  }
  0x35   :  { %1467 = vmatprep.subr.bf16.mxu1 %v2552_v59  ;;  %v2632_v59 = vld [vmem:[%s3770_s1 + $0x3d4] ss:$8 sps:$4 sm:$0xff]  }
  0x37   :  { %1425 = vmatpush2.bf16.msra.mxu0 %v2551_v60  ;;  %v2627_v60 = vld [vmem:[%s3770_s1 + $0x2d0] ss:$8 sps:$4 sm:$0xff]  }
  0x38   :  { %1426 = vmatprep.subr.bf16.mxu0 %v2555_v61  ;;  %1468 = vmatpush2.bf16.msra.mxu1 %v2554_v62  ;;  %v2635_v61 = vld [vmem:[%s3770_s1 + $0x2c4] ss:$8 sps:$4 sm:$0xff]   ;;  %v2630_v62 = vld [vmem:[%s3770_s1 + $0x3d0] ss:$8 sps:$4 sm:$0xff]  }
  0x39   :  { %1469 = vmatprep.subr.bf16.mxu1 %v2558_v63  ;;  %v2638_v63 = vld [vmem:[%s3770_s1 + $0x3c4] ss:$8 sps:$4 sm:$0xff]  }
  0x3b   :  { %1427 = vmatpush2.bf16.msra.mxu0 %v2557_v0  ;;  %v2633_v0 = vld [vmem:[%s3770_s1 + $0x2c0] ss:$8 sps:$4 sm:$0xff]  }
  0x3c   :  { %1428 = vmatprep.subr.bf16.mxu0 %v2561_v2  ;;  %1470 = vmatpush2.bf16.msra.mxu1 %v2560_v1  ;;  %v2641_v1 = vld [vmem:[%s3770_s1 + $0x2b4] ss:$8 sps:$4 sm:$0xff]   ;;  %v2636_v2 = vld [vmem:[%s3770_s1 + $0x3c0] ss:$8 sps:$4 sm:$0xff]  }
  0x3d   :  { %1471 = vmatprep.subr.bf16.mxu1 %v2564_v4  ;;  %v2639_v4 = vld [vmem:[%s3770_s1 + $0x2b0] ss:$8 sps:$4 sm:$0xff]  }
  0x3f   :  { %1429 = vmatpush2.bf16.msra.mxu0 %v2563_v3  ;;  %v2644_v3 = vld [vmem:[%s3770_s1 + $0x3b4] ss:$8 sps:$4 sm:$0xff]  }
  0x40   :  { %1484 = vmatprep.subr.bf16.mxu0 %v2569_v8  ;;  %1472 = vmatpush2.bf16.msra.mxu1 %v2566_v6  ;;  %v2642_v6 = vld [vmem:[%s3770_s1 + $0x3b0] ss:$8 sps:$4 sm:$0xff]   ;;  %v2645_v8 = vld [vmem:[%s3770_s1 + $0x2a0] ss:$8 sps:$4 sm:$0xff]  }
  0x41   :  { %1527 = vmatprep.subr.bf16.mxu1 %v2572_v12  ;;  %v2651_v12 = vld [vmem:[%s3770_s1 + $0x290] ss:$8 sps:$4 sm:$0xff]  }
  0x42   :  { %1431 = vmatmul.mubr.bf16.vlgmr.msra.gmra.mxu0 %v72_v11  ;;  %v2656_v11 = vld [vmem:[%s3770_s1 + $0x394] ss:$8 sps:$4 sm:$0xff]  }
  0x43   :  { %1485 = vmatpush1.bf16.msra.mxu0 %v2567_v13  ;;  %1474 = vmatmul.mubr.bf16.vlgmr.msra.gmra.mxu1 %v74_v14  ;;  %v2654_v13 = vld [vmem:[%s3770_s1 + $0x390] ss:$8 sps:$4 sm:$0xff]   ;;  %v2659_v14 = vld [vmem:[%s3770_s1 + $0x284] ss:$8 sps:$4 sm:$0xff]  }
  0x44   :  { %1486 = vmatprep.subr.bf16.mxu0 %v2575_v15  ;;  %1528 = vmatpush1.bf16.msra.mxu1 %v2570_v16  ;;  %v2657_v15 = vld [vmem:[%s3770_s1 + $0x280] ss:$8 sps:$4 sm:$0xff]   ;;  %v2662_v16 = vld [vmem:[%s3770_s1 + $0x384] ss:$8 sps:$4 sm:$0xff]  }
  0x45   :  { %1529 = vmatprep.subr.bf16.mxu1 %v2578_v17  ;;  %1516 = vmatprep.mubr.bf16.mxu0 %v77_v43  ;;  %v48_v17 = vld [vmem:[%s3771_s0 + $0x20] sm:$0xff] }
  0x46   :  { %1559 = vmatprep.mubr.bf16.mxu1 %v79_v49  ;;  %v2686_v43 = vld [vmem:[%s3770_s1 + $0x544] ss:$8 sps:$4 sm:$0xff]  }
  0x47   :  { %1487 = vmatpush1.bf16.msra.mxu0 %v2573_v18  ;;  %v2660_v18 = vld [vmem:[%s3770_s1 + $0x380] ss:$8 sps:$4 sm:$0xff]   ;;  %v2695_v49 = vld [vmem:[%s3770_s1 + $0x424] ss:$8 sps:$4 sm:$0xff]  }
  0x48   :  { %1488 = vmatprep.subr.bf16.mxu0 %v2581_v19  ;;  %1530 = vmatpush1.bf16.msra.mxu1 %v2576_v20  ;;  %v62_v19 = vld [vmem:[%s3771_s0 + $0x90] sm:$0xff] }
  0x49   :  { %1531 = vmatprep.subr.bf16.mxu1 %v2584_v21  ;;  %v2665_v20 = vld [vmem:[%s3770_s1 + $0x474] ss:$8 sps:$4 sm:$0xff]  }
  0x4a   :  { %v50_v21 = vld [vmem:[%s3771_s0 + $0x30] sm:$0xff] }
  0x4b   :  { %1489 = vmatpush1.bf16.msra.mxu0 %v2579_v22  ;;  %v64_v22 = vld [vmem:[%s3771_s0 + $0xa0] sm:$0xff] }
  0x4c   :  { %1490 = vmatprep.subr.bf16.mxu0 %v2587_v23  ;;  %1532 = vmatpush1.bf16.msra.mxu1 %v2582_v24  ;;  %v76_v23 = vpack.c.bf16 %v62_v19, %v48_v17  ;;  %v2668_v24 = vld [vmem:[%s3770_s1 + $0x574] ss:$8 sps:$4 sm:$0xff]   ;;  %v2743_v17 = vld [vmem:[%s3770_s1 + $0x4a4] ss:$8 sps:$4 sm:$0xff]  }
  0x4d   :  { %1533 = vmatprep.subr.bf16.mxu1 %v2590_v25  ;;  %v2663_v25 = vld [vmem:[%s3770_s1 + $0x470] ss:$8 sps:$4 sm:$0xff]   ;;  %v2746_v19 = vld [vmem:[%s3770_s1 + $0x5a4] ss:$8 sps:$4 sm:$0xff]  }
  0x4f   :  { %1491 = vmatpush1.bf16.msra.mxu0 %v2585_v26  ;;  %v78_v26 = vpack.c.bf16 %v64_v22, %v50_v21  ;;  %v2749_v21 = vld [vmem:[%s3770_s1 + $0x494] ss:$8 sps:$4 sm:$0xff]   ;;  %v2744_v22 = vld [vmem:[%s3770_s1 + $0x5a0] ss:$8 sps:$4 sm:$0xff]  }
  0x50   :  { %1492 = vmatprep.subr.bf16.mxu0 %v2593_v27  ;;  %1534 = vmatpush1.bf16.msra.mxu1 %v2588_v28  ;;  %v2671_v27 = vld [vmem:[%s3770_s1 + $0x464] ss:$8 sps:$4 sm:$0xff]   ;;  %v2666_v28 = vld [vmem:[%s3770_s1 + $0x570] ss:$8 sps:$4 sm:$0xff]  }
  0x51   :  { %1535 = vmatprep.subr.bf16.mxu1 %v2596_v29  ;;  %v2674_v29 = vld [vmem:[%s3770_s1 + $0x564] ss:$8 sps:$4 sm:$0xff]  }
  0x53   :  { %1493 = vmatpush1.bf16.msra.mxu0 %v2591_v30  ;;  %v2669_v30 = vld [vmem:[%s3770_s1 + $0x460] ss:$8 sps:$4 sm:$0xff]  }
  0x54   :  { %1494 = vmatprep.subr.bf16.mxu0 %v2599_v31  ;;  %1536 = vmatpush1.bf16.msra.mxu1 %v2594_v32  ;;  %v2677_v31 = vld [vmem:[%s3770_s1 + $0x454] ss:$8 sps:$4 sm:$0xff]   ;;  %v2672_v32 = vld [vmem:[%s3770_s1 + $0x560] ss:$8 sps:$4 sm:$0xff]  }
  0x55   :  { %1537 = vmatprep.subr.bf16.mxu1 %v2602_v33  ;;  %v53_v33 = vld [vmem:[%s3771_s0 + $0x48] sm:$0xff] }
  0x57   :  { %1495 = vmatpush1.bf16.msra.mxu0 %v2597_v34  ;;  %v67_v34 = vld [vmem:[%s3771_s0 + $0xb8] sm:$0xff] }
  0x58   :  { %1496 = vmatprep.subr.bf16.mxu0 %v2605_v35  ;;  %1538 = vmatpush1.bf16.msra.mxu1 %v2600_v36  ;;  %v2680_v35 = vld [vmem:[%s3770_s1 + $0x554] ss:$8 sps:$4 sm:$0xff]   ;;  %v81_v36 = vpack.c.bf16 %v67_v34, %v53_v33  ;;  %v2756_v34 = vld [vmem:[%s3770_s1 + $0x580] ss:$8 sps:$4 sm:$0xff]  }
  0x59   :  { %1539 = vmatprep.subr.bf16.mxu1 %v2608_v37  ;;  %v2675_v37 = vld [vmem:[%s3770_s1 + $0x450] ss:$8 sps:$4 sm:$0xff]  }
  0x5a   :  { %v71_v33 = vld [vmem:[%s3771_s0 + $0xd8] sm:$0xff] }
  0x5b   :  { %1497 = vmatpush1.bf16.msra.mxu0 %v2603_v38  ;;  %v2683_v38 = vld [vmem:[%s3770_s1 + $0x444] ss:$8 sps:$4 sm:$0xff]  }
  0x5c   :  { %1498 = vmatprep.subr.bf16.mxu0 %v2611_v39  ;;  %1540 = vmatpush1.bf16.msra.mxu1 %v2606_v42  ;;  %v55_v39 = vld [vmem:[%s3771_s0 + $0x58] sm:$0xff] }
  0x5d   :  { %1541 = vmatprep.subr.bf16.mxu1 %v2614_v44  ;;  %v83_v42 = vpack.c.bf16 %v69_v40, %v55_v39  ;;  %v2681_v44 = vld [vmem:[%s3770_s1 + $0x440] ss:$8 sps:$4 sm:$0xff]  }
  0x5f   :  { %1499 = vmatpush1.bf16.msra.mxu0 %v2609_v46  ;;  %v2684_v46 = vld [vmem:[%s3770_s1 + $0x540] ss:$8 sps:$4 sm:$0xff]  }
  0x60   :  { %1500 = vmatprep.subr.bf16.mxu0 %v2617_v48  ;;  %1542 = vmatpush1.bf16.msra.mxu1 %v2612_v50  ;;  %v2687_v48 = vld [vmem:[%s3770_s1 + $0x430] ss:$8 sps:$4 sm:$0xff]  }
  0x61   :  { %1543 = vmatprep.subr.bf16.mxu1 %v2620_v51  ;;  %v2690_v50 = vld [vmem:[%s3770_s1 + $0x530] ss:$8 sps:$4 sm:$0xff]   ;;  %v2698_v51 = vld [vmem:[%s3770_s1 + $0x524] ss:$8 sps:$4 sm:$0xff]  }
  0x63   :  { %1501 = vmatpush2.bf16.msra.mxu0 %v2615_v52  ;;  %v2693_v52 = vld [vmem:[%s3770_s1 + $0x420] ss:$8 sps:$4 sm:$0xff]  }
  0x64   :  { %1502 = vmatprep.subr.bf16.mxu0 %v2623_v53  ;;  %1544 = vmatpush2.bf16.msra.mxu1 %v2618_v54  ;;  %v2701_v53 = vld [vmem:[%s3770_s1 + $0x414] ss:$8 sps:$4 sm:$0xff]   ;;  %v2696_v54 = vld [vmem:[%s3770_s1 + $0x520] ss:$8 sps:$4 sm:$0xff]  }
  0x65   :  { %1545 = vmatprep.subr.bf16.mxu1 %v2626_v55  ;;  %v2704_v55 = vld [vmem:[%s3770_s1 + $0x514] ss:$8 sps:$4 sm:$0xff]  }
  0x67   :  { %1503 = vmatpush2.bf16.msra.mxu0 %v2621_v56  ;;  %v2699_v56 = vld [vmem:[%s3770_s1 + $0x410] ss:$8 sps:$4 sm:$0xff]  }
  0x68   :  { %1504 = vmatprep.subr.bf16.mxu0 %v2629_v57  ;;  %1546 = vmatpush2.bf16.msra.mxu1 %v2624_v58  ;;  %v2707_v57 = vld [vmem:[%s3770_s1 + $0x404] ss:$8 sps:$4 sm:$0xff]   ;;  %v2702_v58 = vld [vmem:[%s3770_s1 + $0x510] ss:$8 sps:$4 sm:$0xff]  }
  0x69   :  { %1547 = vmatprep.subr.bf16.mxu1 %v2632_v59  ;;  %v2710_v59 = vld [vmem:[%s3770_s1 + $0x504] ss:$8 sps:$4 sm:$0xff]  }
  0x6b   :  { %1505 = vmatpush2.bf16.msra.mxu0 %v2627_v60  ;;  %v2705_v60 = vld [vmem:[%s3770_s1 + $0x400] ss:$8 sps:$4 sm:$0xff]  }
  0x6c   :  { %1506 = vmatprep.subr.bf16.mxu0 %v2635_v61  ;;  %1548 = vmatpush2.bf16.msra.mxu1 %v2630_v62  ;;  %v2713_v61 = vld [vmem:[%s3770_s1 + $0x4f4] ss:$8 sps:$4 sm:$0xff]   ;;  %v2708_v62 = vld [vmem:[%s3770_s1 + $0x500] ss:$8 sps:$4 sm:$0xff]  }
  0x6d   :  { %1549 = vmatprep.subr.bf16.mxu1 %v2638_v63  ;;  %v2716_v63 = vld [vmem:[%s3770_s1 + $0x5f4] ss:$8 sps:$4 sm:$0xff]  }
  0x6f   :  { %1507 = vmatpush2.bf16.msra.mxu0 %v2633_v0  ;;  %v2711_v0 = vld [vmem:[%s3770_s1 + $0x4f0] ss:$8 sps:$4 sm:$0xff]  }
  0x70   :  { %1508 = vmatprep.subr.bf16.mxu0 %v2641_v1  ;;  %1550 = vmatpush2.bf16.msra.mxu1 %v2636_v2  ;;  %v2719_v1 = vld [vmem:[%s3770_s1 + $0x4e4] ss:$8 sps:$4 sm:$0xff]   ;;  %v2714_v2 = vld [vmem:[%s3770_s1 + $0x5f0] ss:$8 sps:$4 sm:$0xff]  }
  0x71   :  { %1551 = vmatprep.subr.bf16.mxu1 %v2644_v3  ;;  %v2722_v3 = vld [vmem:[%s3770_s1 + $0x5e4] ss:$8 sps:$4 sm:$0xff]  }
  0x73   :  { %1509 = vmatpush2.bf16.msra.mxu0 %v2639_v4  ;;  %v2717_v4 = vld [vmem:[%s3770_s1 + $0x4e0] ss:$8 sps:$4 sm:$0xff]  }
  0x74   :  { %1510 = vmatprep.subr.bf16.mxu0 %v2647_v5  ;;  %1552 = vmatpush2.bf16.msra.mxu1 %v2642_v6  ;;  %v2725_v5 = vld [vmem:[%s3770_s1 + $0x4d4] ss:$8 sps:$4 sm:$0xff]   ;;  %v2720_v6 = vld [vmem:[%s3770_s1 + $0x5e0] ss:$8 sps:$4 sm:$0xff]  }
  0x75   :  { %1553 = vmatprep.subr.bf16.mxu1 %v2650_v7  ;;  %v2728_v7 = vld [vmem:[%s3770_s1 + $0x5d4] ss:$8 sps:$4 sm:$0xff]  }
  0x77   :  { %1511 = vmatpush2.bf16.msra.mxu0 %v2645_v8  ;;  %v2723_v8 = vld [vmem:[%s3770_s1 + $0x4d0] ss:$8 sps:$4 sm:$0xff]  }
  0x78   :  { %1512 = vmatprep.subr.bf16.mxu0 %v2653_v9  ;;  %1554 = vmatpush2.bf16.msra.mxu1 %v2648_v10  ;;  %v2731_v9 = vld [vmem:[%s3770_s1 + $0x4c4] ss:$8 sps:$4 sm:$0xff]   ;;  %v2726_v10 = vld [vmem:[%s3770_s1 + $0x5d0] ss:$8 sps:$4 sm:$0xff]  }
  0x79   :  { %1555 = vmatprep.subr.bf16.mxu1 %v2656_v11  ;;  %v2734_v11 = vld [vmem:[%s3770_s1 + $0x5c4] ss:$8 sps:$4 sm:$0xff]  }
  0x7b   :  { %1513 = vmatpush2.bf16.msra.mxu0 %v2651_v12  ;;  %v2729_v12 = vld [vmem:[%s3770_s1 + $0x4c0] ss:$8 sps:$4 sm:$0xff]  }
  0x7c   :  { %1514 = vmatprep.subr.bf16.mxu0 %v2659_v14  ;;  %1556 = vmatpush2.bf16.msra.mxu1 %v2654_v13  ;;  %v2737_v13 = vld [vmem:[%s3770_s1 + $0x4b4] ss:$8 sps:$4 sm:$0xff]   ;;  %v2732_v14 = vld [vmem:[%s3770_s1 + $0x5c0] ss:$8 sps:$4 sm:$0xff]  }
  0x7d   :  { %1557 = vmatprep.subr.bf16.mxu1 %v2662_v16  ;;  %v2735_v16 = vld [vmem:[%s3770_s1 + $0x4b0] ss:$8 sps:$4 sm:$0xff]  }
  0x7f   :  { %1515 = vmatpush2.bf16.msra.mxu0 %v2657_v15  ;;  %v2740_v15 = vld [vmem:[%s3770_s1 + $0x5b4] ss:$8 sps:$4 sm:$0xff]  }
  0x80   :  { %1570 = vmatprep.subr.bf16.mxu0 %v2665_v20  ;;  %1558 = vmatpush2.bf16.msra.mxu1 %v2660_v18  ;;  %v2738_v18 = vld [vmem:[%s3770_s1 + $0x5b0] ss:$8 sps:$4 sm:$0xff]   ;;  %v2741_v20 = vld [vmem:[%s3770_s1 + $0x4a0] ss:$8 sps:$4 sm:$0xff]  }
  0x81   :  { %1613 = vmatprep.subr.bf16.mxu1 %v2668_v24  ;;  %v2747_v24 = vld [vmem:[%s3770_s1 + $0x490] ss:$8 sps:$4 sm:$0xff]  }
  0x82   :  { %1517 = vmatmul.mubr.bf16.vlgmr.msra.gmra.mxu0 %v76_v23  ;;  %v2752_v23 = vld [vmem:[%s3770_s1 + $0x594] ss:$8 sps:$4 sm:$0xff]  }
  0x83   :  { %1571 = vmatpush1.bf16.msra.mxu0 %v2663_v25  ;;  %1560 = vmatmul.mubr.bf16.vlgmr.msra.gmra.mxu1 %v78_v26  ;;  %v2755_v25 = vld [vmem:[%s3770_s1 + $0x484] ss:$8 sps:$4 sm:$0xff]   ;;  %v2750_v26 = vld [vmem:[%s3770_s1 + $0x590] ss:$8 sps:$4 sm:$0xff]  }
  0x84   :  { %1572 = vmatprep.subr.bf16.mxu0 %v2671_v27  ;;  %1614 = vmatpush1.bf16.msra.mxu1 %v2666_v28  ;;  %v2758_v27 = vld [vmem:[%s3770_s1 + $0x584] ss:$8 sps:$4 sm:$0xff]   ;;  %v2753_v28 = vld [vmem:[%s3770_s1 + $0x480] ss:$8 sps:$4 sm:$0xff]  }
  0x85   :  { %1615 = vmatprep.subr.bf16.mxu1 %v2674_v29  ;;  %1602 = vmatprep.mubr.bf16.mxu0 %v81_v36  ;;  %v52_v29 = vld [vmem:[%s3771_s0 + $0x40] sm:$0xff] }
  0x86   :  { %1645 = vmatprep.mubr.bf16.mxu1 %v83_v42  ;;  %v68_v36 = vld [vmem:[%s3771_s0 + $0xc0] sm:$0xff] }
  0x87   :  { %1573 = vmatpush1.bf16.msra.mxu0 %v2669_v30  ;;  %v66_v30 = vld [vmem:[%s3771_s0 + $0xb0] sm:$0xff]  ;;  %v2762_v42 = vld [vmem:[%s3770_s1 + $0x660] ss:$8 sps:$4 sm:$0xff]  }
  0x88   :  { %1574 = vmatprep.subr.bf16.mxu0 %v2677_v31  ;;  %1616 = vmatpush1.bf16.msra.mxu1 %v2672_v32  ;;  %v2761_v31 = vld [vmem:[%s3770_s1 + $0x674] ss:$8 sps:$4 sm:$0xff]   ;;  %v57_v32 = vld [vmem:[%s3771_s0 + $0x68] sm:$0xff] }
  0x89   :  { %1617 = vmatprep.subr.bf16.mxu1 %v2680_v35  ;;  %v54_v35 = vld [vmem:[%s3771_s0 + $0x50] sm:$0xff]  ;;  %v85_v39 = vpack.c.bf16 %v71_v33, %v57_v32 }
  0x8a   :  { %v82_v40 = vpack.c.bf16 %v68_v36, %v54_v35 }
  0x8b   :  { %1575 = vmatpush1.bf16.msra.mxu0 %v2675_v37  ;;  %v80_v37 = vpack.c.bf16 %v66_v30, %v52_v29 }
  0x8c   :  { %1576 = vmatprep.subr.bf16.mxu0 %v2683_v38  ;;  %1618 = vmatpush1.bf16.msra.mxu1 %v2678_v41  ;;  %v2759_v38 = vld [vmem:[%s3770_s1 + $0x670] ss:$8 sps:$4 sm:$0xff]   ;;  %v2764_v41 = vld [vmem:[%s3770_s1 + $0x664] ss:$8 sps:$4 sm:$0xff]  }
  0x8d   :  { %1619 = vmatprep.subr.bf16.mxu1 %v2686_v43  ;;  %v2767_v43 = vld [vmem:[%s3770_s1 + $0x654] ss:$8 sps:$4 sm:$0xff]  }
  0x8f   :  { %1577 = vmatpush1.bf16.msra.mxu0 %v2681_v44  ;;  %v2765_v44 = vld [vmem:[%s3770_s1 + $0x650] ss:$8 sps:$4 sm:$0xff]  }
  0x90   :  { %1578 = vmatprep.subr.bf16.mxu0 %v2689_v45  ;;  %1620 = vmatpush1.bf16.msra.mxu1 %v2684_v46  ;;  %v2770_v45 = vld [vmem:[%s3770_s1 + $0x644] ss:$8 sps:$4 sm:$0xff]   ;;  %v2768_v46 = vld [vmem:[%s3770_s1 + $0x640] ss:$8 sps:$4 sm:$0xff]  }
  0x91   :  { %1621 = vmatprep.subr.bf16.mxu1 %v2692_v47  ;;  %v2773_v47 = vld [vmem:[%s3770_s1 + $0x634] ss:$8 sps:$4 sm:$0xff]  }
  0x93   :  { %1579 = vmatpush1.bf16.msra.mxu0 %v2687_v48  ;;  %v2771_v48 = vld [vmem:[%s3770_s1 + $0x630] ss:$8 sps:$4 sm:$0xff]  }
  0x94   :  { %1580 = vmatprep.subr.bf16.mxu0 %v2695_v49  ;;  %1622 = vmatpush1.bf16.msra.mxu1 %v2690_v50  ;;  %v2776_v49 = vld [vmem:[%s3770_s1 + $0x624] ss:$8 sps:$4 sm:$0xff]   ;;  %v2774_v50 = vld [vmem:[%s3770_s1 + $0x620] ss:$8 sps:$4 sm:$0xff]  }
  0x95   :  { %1623 = vmatprep.subr.bf16.mxu1 %v2698_v51  ;;  %v2779_v51 = vld [vmem:[%s3770_s1 + $0x614] ss:$8 sps:$4 sm:$0xff]  }
  0x97   :  { %1581 = vmatpush1.bf16.msra.mxu0 %v2693_v52  ;;  %v2777_v52 = vld [vmem:[%s3770_s1 + $0x610] ss:$8 sps:$4 sm:$0xff]  }
  0x98   :  { %1582 = vmatprep.subr.bf16.mxu0 %v2701_v53  ;;  %1624 = vmatpush1.bf16.msra.mxu1 %v2696_v54  ;;  %v2782_v53 = vld [vmem:[%s3770_s1 + $0x604] ss:$8 sps:$4 sm:$0xff]   ;;  %v2780_v54 = vld [vmem:[%s3770_s1 + $0x600] ss:$8 sps:$4 sm:$0xff]  }
  0x99   :  { %1625 = vmatprep.subr.bf16.mxu1 %v2704_v55  ;;  %v2785_v55 = vld [vmem:[%s3770_s1 + $0x6b4] ss:$8 sps:$4 sm:$0xff]  }
  0x9b   :  { %1583 = vmatpush1.bf16.msra.mxu0 %v2699_v56  ;;  %v2783_v56 = vld [vmem:[%s3770_s1 + $0x6b0] ss:$8 sps:$4 sm:$0xff]  }
  0x9c   :  { %1584 = vmatprep.subr.bf16.mxu0 %v2707_v57  ;;  %1626 = vmatpush1.bf16.msra.mxu1 %v2702_v58  ;;  %v2788_v57 = vld [vmem:[%s3770_s1 + $0x6a4] ss:$8 sps:$4 sm:$0xff]   ;;  %v2786_v58 = vld [vmem:[%s3770_s1 + $0x6a0] ss:$8 sps:$4 sm:$0xff]  }
  0x9d   :  { %1627 = vmatprep.subr.bf16.mxu1 %v2710_v59  ;;  %v2791_v59 = vld [vmem:[%s3770_s1 + $0x694] ss:$8 sps:$4 sm:$0xff]  }
  0x9f   :  { %1585 = vmatpush1.bf16.msra.mxu0 %v2705_v60  ;;  %v2789_v60 = vld [vmem:[%s3770_s1 + $0x690] ss:$8 sps:$4 sm:$0xff]  }
  0xa0   :  { %1586 = vmatprep.subr.bf16.mxu0 %v2713_v61  ;;  %1628 = vmatpush1.bf16.msra.mxu1 %v2708_v62  ;;  %v2794_v61 = vld [vmem:[%s3770_s1 + $0x684] ss:$8 sps:$4 sm:$0xff]   ;;  %v2792_v62 = vld [vmem:[%s3770_s1 + $0x680] ss:$8 sps:$4 sm:$0xff]  }
  0xa1   :  { %1629 = vmatprep.subr.bf16.mxu1 %v2716_v63  ;;  %v56_v63 = vld [vmem:[%s3771_s0 + $0x60] sm:$0xff] }
  0xa3   :  { %1587 = vmatpush2.bf16.msra.mxu0 %v2711_v0  ;;  %v70_v0 = vld [vmem:[%s3771_s0 + $0xd0] sm:$0xff] }
  0xa4   :  { %1588 = vmatprep.subr.bf16.mxu0 %v2719_v1  ;;  %1630 = vmatpush2.bf16.msra.mxu1 %v2714_v2  ;;  %v84_v1 = vpack.c.bf16 %v70_v0, %v56_v63  ;;  %v2828_v2 = vmov 0  }
  0xa5   :  { %1631 = vmatprep.subr.bf16.mxu1 %v2722_v3  ;;  %v2795_v3 = vld [vmem:[%s3772_s3 + $0x38] sm:$0xff]  }
  0xa7   :  { %1589 = vmatpush2.bf16.msra.mxu0 %v2717_v4  ;;  %v2796_v4 = vld [vmem:[%s3772_s3 + $0x30] sm:$0xff]  }
  0xa8   :  { %1590 = vmatprep.subr.bf16.mxu0 %v2725_v5  ;;  %1632 = vmatpush2.bf16.msra.mxu1 %v2720_v6  ;;  %v2797_v5 = vld [vmem:[%s3772_s3 + $0x28] sm:$0xff]   ;;  %v2798_v6 = vld [vmem:[%s3772_s3 + $0x20] sm:$0xff]  }
  0xa9   :  { %1633 = vmatprep.subr.bf16.mxu1 %v2728_v7  ;;  %v2799_v7 = vld [vmem:[%s3772_s3 + $0x18] sm:$0xff]  }
  0xab   :  { %1591 = vmatpush2.bf16.msra.mxu0 %v2723_v8  ;;  %v2800_v8 = vld [vmem:[%s3772_s3 + $0x10] sm:$0xff]  }
  0xac   :  { %1592 = vmatprep.subr.bf16.mxu0 %v2731_v9  ;;  %1634 = vmatpush2.bf16.msra.mxu1 %v2726_v10  ;;  %v2801_v9 = vld [vmem:[%s3772_s3 + $0x8] sm:$0xff]   ;;  %v2802_v10 = vld [vmem:[%s3772_s3] sm:$0xff]  }
  0xad   :  { %1635 = vmatprep.subr.bf16.mxu1 %v2734_v11  ;;  %v2803_v11 = vld [vmem:[%s3772_s3 + $0x40] sm:$0xff]  }
  0xaf   :  { %1593 = vmatpush2.bf16.msra.mxu0 %v2729_v12  ;;  %v2829_v12 = vmov 0.0  }
  0xb0   :  { %1594 = vmatprep.subr.bf16.mxu0 %v2737_v13  ;;  %1636 = vmatpush2.bf16.msra.mxu1 %v2732_v14 }
  0xb1   :  { %1637 = vmatprep.subr.bf16.mxu1 %v2740_v15 }
  0xb3   :  { %1595 = vmatpush2.bf16.msra.mxu0 %v2735_v16 }
  0xb4   :  { %1596 = vmatprep.subr.bf16.mxu0 %v2743_v17  ;;  %1638 = vmatpush2.bf16.msra.mxu1 %v2738_v18 }
  0xb5   :  { %1639 = vmatprep.subr.bf16.mxu1 %v2746_v19 }
  0xb7   :  { %1597 = vmatpush2.bf16.msra.mxu0 %v2741_v20  ;;  %v304_v20 = vlaneseq }
  0xb8   :  { %1598 = vmatprep.subr.bf16.mxu0 %v2749_v21  ;;  %1640 = vmatpush2.bf16.msra.mxu1 %v2744_v22 }
  0xb9   :  { %1641 = vmatprep.subr.bf16.mxu1 %v2752_v23  ;;  %v305_v23 = vshrl.u32 %v304_v20, 7  ;;  %v2805_v20 = vld [vmem:[%s3773_s5 + $0x30] sm:$0xff]  }
  0xbb   :  { %1599 = vmatpush2.bf16.msra.mxu0 %v2747_v24 }
  0xbc   :  { %1600 = vmatprep.subr.bf16.mxu0 %v2755_v25  ;;  %1642 = vmatpush2.bf16.msra.mxu1 %v2750_v26  ;;  %v310_v26 = vsub.s32 1, %v305_v23 }
  0xbd   :  { %1643 = vmatprep.subr.bf16.mxu1 %v2758_v27  ;;  %v302_v27 = vld [vmem:[%s3774_s2] sm:$0x3] }
  0xbf   :  { %1601 = vmatpush2.bf16.msra.mxu0 %v2753_v28  ;;  %v306_v28 = vsub.s32 0, %v305_v23  ;;  %v2808_v23 = vld [vmem:[%s3773_s5 + $0x18] sm:$0xff]  }
  0xc0   :  { %1656 = vmatprep.subr.bf16.mxu0 %v2761_v31  ;;  %1644 = vmatpush2.bf16.msra.mxu1 %v2756_v34  ;;  %v311_v31 = vrot.slane %v302_v27, %v310_v26  ;;  %v2811_v26 = vld [vmem:[%s3773_s5] sm:$0xff]  }
  0xc1   :  { %1788 = vmatprep.subr.bf16.mxu1 %v2828_v2  ;;  %v307_v32 = vrot.slane %v302_v27, %v306_v28  ;;  %v2384_v27 = vld [vmem:[%s3775_s4] ss:$0 sm:$0xff] }
  0xc2   :  { %1603 = vmatmul.mubr.bf16.vlgmr.msra.gmra.mxu0 %v80_v37 }
  0xc3   :  { %1657 = vmatpush1.bf16.msra.mxu0 %v2759_v38  ;;  %2383 = vmatprep.mubr.msk.bf16.mxu0 %vm1394_vm0, %v85_v39 }
  0xc4   :  { %1646 = vmatmul.mubr.bf16.vlgmr.msra.gmra.mxu1 %v82_v40  ;;  %1658 = vmatprep.subr.bf16.mxu0 %v2764_v41 }
  0xc5   :  { %1789 = vmatpush1.bf16.msra.mxu1 %v2795_v3 }
  0xc6   :  { %1790 = vmatprep.subr.bf16.mxu1 %v2828_v2 }
  0xc7   :  { %1659 = vmatpush1.bf16.msra.mxu0 %v2762_v42 }
  0xc8   :  { %1660 = vmatprep.subr.bf16.mxu0 %v2767_v43 }
  0xc9   :  { %1791 = vmatpush1.bf16.msra.mxu1 %v2796_v4 }
  0xca   :  { %1792 = vmatprep.subr.bf16.mxu1 %v2828_v2 }
  0xcb   :  { %1661 = vmatpush1.bf16.msra.mxu0 %v2765_v44 }
  0xcc   :  { %1662 = vmatprep.subr.bf16.mxu0 %v2770_v45 }
  0xcd   :  { %1793 = vmatpush1.bf16.msra.mxu1 %v2797_v5 }
  0xce   :  { %1794 = vmatprep.subr.bf16.mxu1 %v2828_v2 }
  0xcf   :  { %1663 = vmatpush1.bf16.msra.mxu0 %v2768_v46 }
  0xd0   :  { %1664 = vmatprep.subr.bf16.mxu0 %v2773_v47 }
  0xd1   :  { %1795 = vmatpush1.bf16.msra.mxu1 %v2798_v6 }
  0xd2   :  { %1796 = vmatprep.subr.bf16.mxu1 %v2828_v2 }
  0xd3   :  { %1665 = vmatpush1.bf16.msra.mxu0 %v2771_v48 }
  0xd4   :  { %1666 = vmatprep.subr.bf16.mxu0 %v2776_v49 }
  0xd5   :  { %1797 = vmatpush1.bf16.msra.mxu1 %v2799_v7 }
  0xd6   :  { %1798 = vmatprep.subr.bf16.mxu1 %v2828_v2 }
  0xd7   :  { %1667 = vmatpush1.bf16.msra.mxu0 %v2774_v50 }
  0xd8   :  { %1668 = vmatprep.subr.bf16.mxu0 %v2779_v51 }
  0xd9   :  { %1799 = vmatpush1.bf16.msra.mxu1 %v2800_v8 }
  0xda   :  { %1800 = vmatprep.subr.bf16.mxu1 %v2828_v2 }
  0xdb   :  { %1669 = vmatpush1.bf16.msra.mxu0 %v2777_v52 }
  0xdc   :  { %1670 = vmatprep.subr.bf16.mxu0 %v2782_v53 }
  0xdd   :  { %1801 = vmatpush1.bf16.msra.mxu1 %v2801_v9 }
  0xde   :  { %1802 = vmatprep.subr.bf16.mxu1 %v2828_v2 }
  0xdf   :  { %1671 = vmatpush1.bf16.msra.mxu0 %v2780_v54 }
  0xe0   :  { %1680 = vmatprep.subr.bf16.mxu0 %v2785_v55 }
  0xe1   :  { %1803 = vmatpush1.bf16.msra.mxu1 %v2802_v10 }
  0xe2   :  { %1818 = vmatprep.subr.bf16.mxu1 %v2828_v2 }
  0xe3   :  { %1681 = vmatpush2.bf16.msra.mxu0 %v2783_v56 }
  0xe4   :  { %1682 = vmatprep.subr.bf16.mxu0 %v2788_v57 }
  0xe5   :  { %1819 = vmatpush2.bf16.msra.mxu1 %v2803_v11 }
  0xe6   :  { %2430 = vmatprep.subr.bf16.mxu1 %v2829_v12 }
  0xe7   :  { %1683 = vmatpush2.bf16.msra.mxu0 %v2786_v58 }
  0xe8   :  { %1684 = vmatprep.subr.bf16.mxu0 %v2791_v59 }
  0xeb   :  { %1685 = vmatpush2.bf16.msra.mxu0 %v2789_v60 }
  0xec   :  { %1686 = vmatprep.subr.bf16.mxu0 %v2794_v61 }
  0xef   :  { %1687 = vmatpush2.bf16.msra.mxu0 %v2792_v62 }
  0xf0   :  { %2450 = vmatprep.subr.bf16.mxu0 %v2829_v12 }
  0xf2   :  { %1689 = vmatmul.mubr.bf16.vlgmr.msra.gmra.mxu0 %v84_v1 }
  0xf3   :  { %2454 = vmatprep.mubr.msk.bf16.mxu0 %vm2830_vm2, %v2829_v12 }
 0x102   :  { %v1432_v13 = vpop.f32.mrf.mxu0 }
 0x103   :  { %v1475_v15 = vpop.f32.mrf.mxu1  ;;  %v1433_v38 = vadd.f32 %v1432_v13, %v307_v32 }
 0x104   :  { %v1434_v14 = vpop.f32.mrf.mxu0 }
 0x105   :  { %v1477_v17 = vpop.f32.mrf.mxu1  ;;  %v1435_v36 = vadd.f32 %v1434_v14, %v311_v31  ;;  %v1476_v45 = vadd.f32 %v1475_v15, %v1433_v38  ;;  %v2813_v38 = vld [vmem:[%s3776_s7] sm:$0xff]  }
 0x106   :  { %v1436_v16 = vpop.f32.mrf.mxu0 }
 0x107   :  { %v1479_v19 = vpop.f32.mrf.mxu1  ;;  %v1437_v37 = vadd.f32 %v1436_v16, %v307_v32  ;;  %v1478_v43 = vadd.f32 %v1477_v17, %v1435_v36 }
 0x108   :  { %v1438_v18 = vpop.f32.mrf.mxu0 }
 0x109   :  { %v1481_v22 = vpop.f32.mrf.mxu1  ;;  %v1439_v40 = vadd.f32 %v1438_v18, %v311_v31  ;;  %v1480_v44 = vadd.f32 %v1479_v19, %v1437_v37  ;;  %v2804_v18 = vld [vmem:[%s3773_s5 + $0x38] sm:$0xff]   ;;  %v2812_v37 = vld [vmem:[%s3776_s7 + $0x8] sm:$0xff]  }
 0x10a   :  { %2451 = vmatpush3.bf16.msra.mxu0 %v2812_v37 }
 0x10b   :  { %v1482_v46 = vadd.f32 %v1481_v22, %v1439_v40  ;;  %v2807_v22 = vld [vmem:[%s3773_s5 + $0x20] sm:$0xff]   ;;  %2452 = vmatprep.subr.bf16.mxu0 %v2829_v12  ;;  %v2024_v40 = vld [vmem:[%s3778_s11 + $0x8] sm:$0xff] }
 0x10e   :  { %2453 = vmatpush3.bf16.msra.mxu0 %v2813_v38 }
 0x10f   :  { %2458 = vmatprep.subr.bf16.mxu0 %v2829_v12 }
 0x142   :  { %v1518_v21 = vpop.f32.mrf.mxu0 }
 0x143   :  { %v1561_v25 = vpop.f32.mrf.mxu1  ;;  %v1519_v49 = vadd.f32 %v1518_v21, %v1476_v45  ;;  %v2806_v21 = vld [vmem:[%s3773_s5 + $0x28] sm:$0xff]  }
 0x144   :  { %v1520_v24 = vpop.f32.mrf.mxu0 }
 0x145   :  { %v1563_v30 = vpop.f32.mrf.mxu1  ;;  %v1521_v47 = vadd.f32 %v1520_v24, %v1478_v43  ;;  %v1562_v55 = vadd.f32 %v1561_v25, %v1519_v49  ;;  %v2809_v24 = vld [vmem:[%s3773_s5 + $0x10] sm:$0xff]   ;;  %v2810_v25 = vld [vmem:[%s3773_s5 + $0x8] sm:$0xff]  }
 0x146   :  { %v1522_v29 = vpop.f32.mrf.mxu0 }
 0x147   :  { %v1565_v34 = vpop.f32.mrf.mxu1  ;;  %v1523_v48 = vadd.f32 %v1522_v29, %v1480_v44  ;;  %v1564_v53 = vadd.f32 %v1563_v30, %v1521_v47 }
 0x148   :  { %v1524_v33 = vpop.f32.mrf.mxu0 }
 0x149   :  { %v1567_v39 = vpop.f32.mrf.mxu1  ;;  %v1525_v52 = vadd.f32 %v1524_v33, %v1482_v46  ;;  %v1566_v54 = vadd.f32 %v1565_v34, %v1523_v48 }
 0x14b   :  { %v1568_v58 = vadd.f32 %v1567_v39, %v1525_v52  ;;  %v2023_v39 = vld [vmem:[%s3778_s11] sm:$0xff] }
 0x14c   :  { %2104 = vrot.lane.b32.xlu1 %v2023_v39, %s2831_s20  ;;  %v2815_v52 = vld [vmem:[%s3777_s8] sm:$0xff]  }
 0x150   :  { %2106 = vrot.lane.b32.xlu1 %v2024_v40, %s2831_s20 }
 0x182   :  { %v1604_v35 = vpop.f32.mrf.mxu0 }
 0x183   :  { %v1605_v61 = vadd.f32 %v1604_v35, %v1562_v55 }
 0x184   :  { %v1606_v41 = vpop.f32.mrf.mxu0  ;;  %v1647_v42 = vpop.f32.mrf.mxu1 }
 0x185   :  { %v1607_v59 = vadd.f32 %v1606_v41, %v1564_v53  ;;  %v1648_v4 = vadd.f32 %v1647_v42, %v1605_v61  ;;  %v2395_v41 = vld [vmem:[%s3779_s6] ss:$0 sm:$0xff] }
 0x186   :  { %v1608_v50 = vpop.f32.mrf.mxu0  ;;  %v1649_v51 = vpop.f32.mrf.mxu1  ;;  %v2021_v53 = vld [vmem:[%s3780_s10] sm:$0xff] }
 0x187   :  { %v1609_v60 = vadd.f32 %v1608_v50, %v1566_v54  ;;  %v1650_v2 = vadd.f32 %v1649_v51, %v1607_v59  ;;  %v2814_v50 = vld [vmem:[%s3777_s8 + $0x8] sm:$0xff]  }
 0x188   :  { %v1610_v56 = vpop.f32.mrf.mxu0  ;;  %v1651_v57 = vpop.f32.mrf.mxu1  ;;  %v2022_v54 = vld [vmem:[%s3780_s10 + $0x8] sm:$0xff] }
 0x189   :  { %v1611_v63 = vadd.f32 %v1610_v56, %v1568_v58  ;;  %v1652_v3 = vadd.f32 %v1651_v57, %v1609_v60  ;;  %v2027_v55 = vpack.c.bf16 %v2022_v54, %v2021_v53  ;;  %v2404_v58 = vld [vmem:[%s3781_s9] ss:$0 sm:$0xff]  ;;  %s2832_s9 = smov 64  }
 0x18a   :  { %v1653_v0 = vpop.f32.mrf.mxu1 }
 0x18b   :  { %v1654_v6 = vadd.f32 %v1653_v0, %v1611_v63 }
 0x1b2   :  { %v1690_v62 = vpop.f32.mrf.mxu0 }
 0x1b3   :  { %v1691_v9 = vadd.f32 %v1690_v62, %v1648_v4 }
 0x1b4   :  { %v1692_v1 = vpop.f32.mrf.mxu0 }
 0x1b5   :  { %v1693_v7 = vadd.f32 %v1692_v1, %v1650_v2  ;;  %v1699_v16 = vmax.f32 %v1691_v9, 0.0 }
 0x1b6   :  { %v1694_v5 = vpop.f32.mrf.mxu0 }
 0x1b7   :  { %v1695_v8 = vadd.f32 %v1694_v5, %v1652_v3  ;;  %v1700_v14 = vmax.f32 %v1693_v7, 0.0 }
 0x1b8   :  { %v1696_v10 = vpop.f32.mrf.mxu0 }
 0x1b9   :  { %v1697_v11 = vadd.f32 %v1696_v10, %v1654_v6  ;;  %v1701_v13 = vmax.f32 %v1695_v8, 0.0 }
 0x1bb   :  { %v1702_v15 = vmax.f32 %v1697_v11, 0.0  ;;  %v1703_v19 = vpack.c.bf16 %v1701_v13, %v1699_v16 }
 0x1bd   :  { %v1704_v17 = vpack.c.bf16 %v1702_v15, %v1700_v14 }
 0x1bf   :  { %2394 = vmatprep.mubr.msk.bf16.mxu1 %vm1784_vm1, %v1704_v17 }
 0x1c0   :  { %1821 = vmatmul.mubr.bf16.vlgmr.msra.gmra.mxu1 %v1703_v19 }
 0x1c1   :  { %2431 = vmatpush3.bf16.msra.mxu1 %v2804_v18  ;;  %2446 = vmatprep.mubr.msk.bf16.mxu1 %vm2830_vm2, %v2829_v12 }
 0x1c2   :  { %2432 = vmatprep.subr.bf16.mxu1 %v2829_v12 }
 0x1c5   :  { %2433 = vmatpush3.bf16.msra.mxu1 %v2805_v20 }
 0x1c6   :  { %2434 = vmatprep.subr.bf16.mxu1 %v2829_v12 }
 0x1c9   :  { %2435 = vmatpush3.bf16.msra.mxu1 %v2806_v21  ;;  %v2105_v21 = vpop.permute.xlu1 %2104 }
 0x1ca   :  { %2436 = vmatprep.subr.bf16.mxu1 %v2829_v12 }
 0x1cd   :  { %2437 = vmatpush3.bf16.msra.mxu1 %v2807_v22 }
 0x1ce   :  { %2438 = vmatprep.subr.bf16.mxu1 %v2829_v12 }
 0x1d1   :  { %2439 = vmatpush3.bf16.msra.mxu1 %v2808_v23  ;;  %v2107_v23 = vpop.permute.xlu1 %2106 }
 0x1d2   :  { %2440 = vmatprep.subr.bf16.mxu1 %v2829_v12 }
 0x1d5   :  { %2441 = vmatpush3.bf16.msra.mxu1 %v2809_v24 }
 0x1d6   :  { %2442 = vmatprep.subr.bf16.mxu1 %v2829_v12 }
 0x1d9   :  { %2443 = vmatpush3.bf16.msra.mxu1 %v2810_v25 }
 0x1da   :  { %2444 = vmatprep.subr.bf16.mxu1 %v2829_v12 }
 0x1dd   :  { %2445 = vmatpush3.bf16.msra.mxu1 %v2811_v26 }
 0x280   :  { %v1822_v28 = vpop.f32.mrf.mxu1 }
 0x281   :  { %v1823_v30 = vadd.f32 %v2384_v27, %v1822_v28 }
 0x282   :  { %v1824_v29 = vpop.f32.mrf.mxu1 }
 0x283   :  { %v1829_v34 = vmax.f32 %v1823_v30, 0.0 }
 0x284   :  { %v1825_v31 = vpop.f32.mrf.mxu1 }
 0x285   :  { %v1826_v32 = vadd.f32 %v2384_v27, %v1825_v31 }
 0x286   :  { %v1827_v33 = vpop.f32.mrf.mxu1 }
 0x287   :  { %v1830_v35 = vmax.f32 %v1826_v32, 0.0 }
 0x289   :  { %v1831_v36 = vpack.c.bf16 %v1830_v35, %v1829_v34 }
 0x28b   :  { %2447 = vmatmul.mubr.bf16.vlgmr.msra.gmra.mxu1 %v1831_v36 }
 0x34b   :  { %v1937_v42 = vpop.f32.mrf.mxu1 }
 0x34c   :  { %v1938_v44 = vadd.f32 %v2395_v41, %v1937_v42 }
 0x34d   :  { %v2448_v43 = vpop.f32.mrf.mxu1 }
 0x34e   :  { %v1944_v48 = vmax.f32 %v1938_v44, 0.0 }
 0x34f   :  { %v1940_v45 = vpop.f32.mrf.mxu1 }
 0x350   :  { %v1941_v46 = vadd.f32 %v2395_v41, %v1940_v45 }
 0x351   :  { %v2449_v47 = vpop.f32.mrf.mxu1 }
 0x352   :  { %v1945_v49 = vmax.f32 %v1941_v46, 0.0 }
 0x354   :  { %v1946_v51 = vpack.c.bf16 %v1945_v49, %v1944_v48 }
 0x356   :  { %2455 = vmatmul.mubr.msk.bf16.vlgmr.msra.gmra.mxu0 %vm1970_vm3, %v1946_v51 }
 0x357   :  { %2459 = vmatpush3.bf16.msra.mxu0 %v2814_v50  ;;  %2462 = vmatprep.mubr.msk.bf16.mxu0 %vm2830_vm2, %v2829_v12 }
 0x358   :  { %2460 = vmatprep.subr.bf16.mxu0 %v2829_v12 }
 0x35b   :  { %2461 = vmatpush3.bf16.msra.mxu0 %v2815_v52 }
 0x35e   :  { %2463 = vmatmul.mubr.msk.bf16.vlgmr.msra.gmra.mxu0 %vm1970_vm3, %v2027_v55 }
 0x416   :  { %v2008_v56 = vpop.f32.mrf.mxu0 }
 0x417   :  { %v2009_v61 = vadd.f32 %v2404_v58, %v2008_v56 }
 0x418   :  { %v2456_v57 = vpop.f32.mrf.mxu0 }
 0x41a   :  { %v2011_v59 = vpop.f32.mrf.mxu0 }
 0x41b   :  { %v2012_v1 = vadd.f32 %v2404_v58, %v2011_v59 }
 0x41c   :  { %v2457_v60 = vpop.f32.mrf.mxu0 }
 0x41e   :  { %v2077_v62 = vpop.f32.mrf.mxu0 }
 0x41f   :  { %v2084_v63 = vadd.f32 %v2077_v62, %v2009_v61 }
 0x420   :  { %v2464_v0 = vpop.f32.mrf.mxu0 }
 0x421   :  { %v2411_v2 = vmul.f32 -1.442695, %v2084_v63 }
 0x422   :  { %v2080_v3 = vpop.f32.mrf.mxu0 }
 0x423   :  { %2816 = vpow2.f32 %v2411_v2  ;;  %v2085_v12 = vadd.f32 %v2080_v3, %v2012_v1 }
 0x424   :  { %v2465_v4 = vpop.f32.mrf.mxu0 }
 0x425   :  { %v2412_v5 = vmul.f32 -1.442695, %v2085_v12 }
 0x427   :  { %2818 = vpow2.f32 %v2412_v5 }
 0x430   :  { %v2817_v6 = vpop.eup %2816 }
 0x431   :  { %v2092_v7 = vadd.f32 1.0, %v2817_v6 }
 0x433   :  { %2820 = vrcp.f32 %v2092_v7 }
 0x434   :  { %v2819_v8 = vpop.eup %2818 }
 0x435   :  { %v2093_v9 = vadd.f32 1.0, %v2819_v8 }
 0x437   :  { %2822 = vrcp.f32 %v2093_v9 }
 0x440   :  { %v2821_v10 = vpop.eup %2820 }
 0x441   :  { %v2098_v11 = vmul.f32 2.0, %v2821_v10  ;;  %v2110_v22 = vmul.f32 %v2821_v10, %v2105_v21 }
 0x443   :  { %v2413_v13 = vadd.f32 -1.0, %v2098_v11 }
 0x444   :  { %v2823_v14 = vpop.eup %2822 }
 0x445   :  { %2114 = vrot.lane.b32.xlu0 %v2413_v13, %s2832_s9  ;;  %v2099_v15 = vmul.f32 2.0, %v2823_v14  ;;  %v2111_v26 = vmul.f32 %v2823_v14, %v2107_v23 }
 0x447   :  { %v2414_v16 = vadd.f32 -1.0, %v2099_v15 }
 0x449   :  { %2116 = vrot.lane.b32.xlu0 %v2414_v16, %s2832_s9 }
 0x4b7   :  { %v2115_v17 = vpop.permute.xlu0 %2114 }
 0x4b8   :  { %v2120_v18 = vmul.f32 %v2821_v10, %v2115_v17 }
 0x4ba   :  { %2124 = vrot.lane.b32.xlu0 %v2120_v18, %s2831_s20 }
 0x4bb   :  { %v2117_v19 = vpop.permute.xlu0 %2116 }
 0x4bc   :  { %v2121_v20 = vmul.f32 %v2823_v14, %v2117_v19 }
 0x4be   :  { %2126 = vrot.lane.b32.xlu1 %v2121_v20, %s2831_s20 }
 0x52c   :  { %v2125_v24 = vpop.permute.xlu0 %2124 }
 0x52d   :  { %v2130_v25 = vadd.f32 %v2125_v24, %v2110_v22 }
 0x52f   :  { %2824 = vtanh.f32 %v2130_v25 }
 0x530   :  { %v2127_v27 = vpop.permute.xlu1 %2126 }
 0x531   :  { %v2131_v28 = vadd.f32 %v2127_v27, %v2111_v26 }
 0x533   :  { %2826 = vtanh.f32 %v2131_v28 }
 0x53c   :  { %v2825_v29 = vpop.eup %2824 }
 0x53d   :  { %2136 = vrot.lane.b32.xlu0 %v2825_v29, %s2832_s9 }
 0x540   :  { %v2827_v30 = vpop.eup %2826 }
 0x541   :  { %2138 = vrot.lane.b32.xlu1 %v2827_v30, %s2832_s9 }
 0x5af   :  { %v2137_v31 = vpop.permute.xlu0 %2136 }
 0x5b0   :  { %v2142_v32 = vmul.f32 %v2821_v10, %v2137_v31 }
 0x5b2   :  { %2146 = vrot.lane.b32.xlu0 %v2142_v32, %s2831_s20 }
 0x5b3   :  { %v2139_v33 = vpop.permute.xlu1 %2138 }
 0x5b4   :  { %v2143_v34 = vmul.f32 %v2823_v14, %v2139_v33 }
 0x5b6   :  { %2148 = vrot.lane.b32.xlu1 %v2143_v34, %s2831_s20 }
 0x624   :  { %v2147_v35 = vpop.permute.xlu0 %2146 }
 0x625   :  { %2152 = vst.msk [vmem:[%s3782_s12] sm:$0xff] %vm1970_vm3, %v2147_v35  ;;  %2154 = vst.msk [vmem:[%s3783_s13] sm:$0xff] %vm1970_vm3, %v2147_v35 }
 0x626   :  { %2157 = vst.msk [vmem:[%s3783_s13] sm:$0xff] %vm2156_vm4, %v2130_v25 }
 0x628   :  { %v2149_v36 = vpop.permute.xlu1 %2148 }
 0x629   :  { %2153 = vst.msk [vmem:[%s3782_s12 + $0x8] sm:$0xff] %vm1970_vm3, %v2149_v36  ;;  %2155 = vst.msk [vmem:[%s3783_s13 + $0x8] sm:$0xff] %vm1970_vm3, %v2149_v36 }
 0x62a   :  { %2158 = vst.msk [vmem:[%s3783_s13 + $0x8] sm:$0xff] %vm2156_vm4, %v2131_v28 }

</bundles_post_ra>
